<compile_context>
chip_gen: v7x
topology: tpu7x:2x2x1
jax: 0.10.0
libtpu: 0.0.40
codegen_flags: <defaults>
</compile_context>

<pallas_src>
import functools

import jax
import jax.numpy as jnp
from jax.experimental import pallas as pl
from jax.experimental.pallas import tpu as pltpu  # noqa: F401  (TPU backend parity)

HIDDEN_DIM = 32
NUM_LAYERS = 2          # kernel is specialized (wavefront-fused) for exactly 2 layers
OBS_DIMS = 4
OUTPUT_DIM = 3
BATCH = 2
SEQ_LEN = 8

B_PAD = 8               # f32 sublane tile: pad batch so every (B, H) state is a whole vreg
D_PAD = 8               # pad obs feature dim so the hoisted x @ W_ih0 matmul is 8-aligned
PACK_COLS = 384         # 3 * 128: each fused-RHS sub-block starts at a 128-lane boundary


def _pack_layout(hidden_dim):
    """Static row offsets of each sub-array inside the single packed weight buffer."""
    H = hidden_dim
    off = {}
    r = 0
    for name, n in (("w_big", H), ("w_ih0", D_PAD),
                    ("b_gi0", B_PAD), ("b_gi1", B_PAD),
                    ("b_hn0", B_PAD), ("b_hn1", B_PAD),
                    ("lin_w", H), ("lin_b", B_PAD)):
        off[name] = r
        r += n
    off["rows"] = ((r + 7) // 8) * 8
    return off


# ---------------------------------------------------------------------------
# Fused Pallas kernel: 2-layer GRU (wavefront) + Linear + tanh, single call
# ---------------------------------------------------------------------------
def _gru_cell(gi, gh, h_prev, b_hn, H):
    """One GRU step. `gi` already holds b_ih (+ folded b_hh for the r,z gates)."""
    rz = jax.nn.sigmoid(gi[:, :2 * H] + gh[:, :2 * H])       # fused r,z sigmoid
    r = rz[:, :H]
    z = rz[:, H:]
    n = jnp.tanh(gi[:, 2 * H:] + r * (gh[:, 2 * H:] + b_hn))
    return (1.0 - z) * n + z * h_prev


def fused_gru_regression_kernel(x_ref, w_ref, o_ref, *, seq_len, batch, hidden, out_dim):
    T, Bp, H = seq_len, B_PAD, hidden
    G = 3 * H
    L = _pack_layout(H)

    # ---- static, tile-aligned views into the single packed weight buffer ----
    w_big = w_ref[L["w_big"]:L["w_big"] + H, :]                 # (H, 384) = [W_hh0 |0| W_ih1 |0| W_hh1 |0]
    w_ih0 = w_ref[L["w_ih0"]:L["w_ih0"] + D_PAD, 0:G]           # (8, 3H); rows >= obs_dims are zero
    b_gi0 = w_ref[L["b_gi0"]:L["b_gi0"] + Bp, 0:G]              # (8, 3H) pre-broadcast, b_hh_rz folded in
    b_gi1 = w_ref[L["b_gi1"]:L["b_gi1"] + Bp, 0:G]
    b_hn0 = w_ref[L["b_hn0"]:L["b_hn0"] + Bp, 0:H]
    b_hn1 = w_ref[L["b_hn1"]:L["b_hn1"] + Bp, 0:H]
    lin_w = w_ref[L["lin_w"]:L["lin_w"] + H, 0:out_dim]
    lin_b = w_ref[L["lin_b"]:L["lin_b"] + Bp, 0:out_dim]

    # ---- layer-0 input-to-hidden matmul hoisted out of the recurrence ----
    gi0_all = jnp.dot(x_ref[...], w_ih0, preferred_element_type=jnp.float32)   # (T*8, 3H)
    # bias adds are independent of the recurrence -> off the serial path
    gi0 = [gi0_all[s * Bp:(s + 1) * Bp, :] + b_gi0 for s in range(T)]

    # ---- wavefront over both layers: wave s = layer-0 step s + layer-1 step s-1 ----
    zeros_h = jnp.zeros((Bp, H), jnp.float32)                   # h0 = 0 (matches th.zeros)
    # wave 0: both hidden states are zero -> h @ W_hh == 0, no matmul needed
    h0 = _gru_cell(gi0[0], jnp.zeros((Bp, G), jnp.float32), zeros_h, b_hn0, H)
    h1 = zeros_h
    for s in range(1, T + 1):                                   # fully unrolled (T = 8)
        lhs = jnp.concatenate([h0, h1], axis=0)                 # (16, H)
        big = jnp.dot(lhs, w_big, preferred_element_type=jnp.float32)   # one MXU pass / wave
        gh0 = big[:Bp, 0:G]                                     # h0 @ W_hh0   (layer-0 step s)
        gi1 = big[:Bp, 128:128 + G] + b_gi1                     # h0 @ W_ih1   (layer-1 input = out0[s-1])
        gh1 = big[Bp:, 256:256 + G]                             # h1 @ W_hh1   (layer-1 step s-1)
        h1 = _gru_cell(gi1, gh1, h1, b_hn1, H)
        if s < T:
            h0 = _gru_cell(gi0[s], gh0, h0, b_hn0, H)
    # TODO(synk): nn.GRU inter-layer dropout applies only in training mode;
    # inference semantics (dropout = identity) are implemented here.

    # ---- head: tanh(Linear(last timestep of last layer)) -> only HBM write ----
    head = jnp.dot(h1, lin_w, preferred_element_type=jnp.float32) + lin_b       # (8, out_dim)
    o_ref[...] = jnp.tanh(head)[0:batch, :]


# ---------------------------------------------------------------------------
# Wrapper
# ---------------------------------------------------------------------------
@functools.partial(jax.jit, static_argnames=("hidden_dim", "output_dim"))
def gru_regression_forward(x, w_pack, hidden_dim, output_dim):
    """x: (B, T, obs_dims) batch_first (like the PyTorch module). Returns (B, output_dim)."""
    B, T, D = x.shape
    assert B <= B_PAD and D <= D_PAD
    # Time-major, batch padded to the 8-row sublane tile, features padded to 8:
    # every per-step slice / hidden state inside the kernel is a whole aligned block.
    x_tm = jnp.transpose(x, (1, 0, 2))
    x_tm = jnp.pad(x_tm, ((0, 0), (0, B_PAD - B), (0, D_PAD - D)))
    x_tm = x_tm.reshape(T * B_PAD, D_PAD)

    kernel = functools.partial(fused_gru_regression_kernel, seq_len=T, batch=B,
                               hidden=hidden_dim, out_dim=output_dim)
    # Single invocation, no grid: exactly two HBM->VMEM operand DMAs (x + packed
    # weights, ~130 KB total VMEM) and one tiny (B, out_dim) HBM write.
    # On v7x, independent requests could be sharded over the two TensorCores with a
    # leading "parallel" grid axis; at B=2 there is nothing to split.
    return pl.pallas_call(
        kernel,
        out_shape=jax.ShapeDtypeStruct((B, output_dim), jnp.float32),
    )(x_tm, w_pack)


# ---------------------------------------------------------------------------
# Parameters (PyTorch-equivalent layout) + one-time offline packing/folding
# ---------------------------------------------------------------------------
def init_params(key, obs_dims, hidden_dim, num_layers, output_dim):
    params = {"gru_layers": []}
    bound = 1.0 / jnp.sqrt(hidden_dim)
    for layer in range(num_layers):
        d_in = obs_dims if layer == 0 else hidden_dim
        key, k1, k2, k3, k4 = jax.random.split(key, 5)
        params["gru_layers"].append({
            "w_ih": jax.random.uniform(k1, (d_in, 3 * hidden_dim), jnp.float32, -bound, bound),
            "w_hh": jax.random.uniform(k2, (hidden_dim, 3 * hidden_dim), jnp.float32, -bound, bound),
            "b_ih": jax.random.uniform(k3, (1, 3 * hidden_dim), jnp.float32, -bound, bound),
            "b_hh": jax.random.uniform(k4, (1, 3 * hidden_dim), jnp.float32, -bound, bound),
        })
    key, k1, k2 = jax.random.split(key, 3)
    lin_bound = 1.0 / jnp.sqrt(hidden_dim)
    params["lin_w"] = jax.random.uniform(k1, (hidden_dim, output_dim), jnp.float32,
                                         -lin_bound, lin_bound)
    params["lin_b"] = jax.random.uniform(k2, (1, output_dim), jnp.float32,
                                         -lin_bound, lin_bound)
    return params


def prepare_kernel_params(params, hidden_dim, output_dim, obs_dims):
    """One-time packing (off the forward path) of all weights into a single buffer.

    Bias folding: b_gi = b_ih + [b_hh_r, b_hh_z, 0]; b_hn kept separate (used inside r*(.)).
    Fused recurrence RHS: [W_hh0 | W_ih1 | W_hh1] with each block at a 128-lane-aligned
    column start, so the in-kernel slices of the wave matmul result are free views.
    Biases are pre-broadcast to 8 rows (no broadcast_in_dim in the kernel trace).
    """
    H, G = hidden_dim, 3 * hidden_dim
    assert len(params["gru_layers"]) == NUM_LAYERS == 2, "kernel is specialized for 2 GRU layers"
    l0, l1 = params["gru_layers"]

    def fold(layer):
        b_gi = layer["b_ih"].at[:, :2 * H].add(layer["b_hh"][:, :2 * H])
        b_hn = layer["b_hh"][:, 2 * H:]
        return b_gi, b_hn

    b_gi0, b_hn0 = fold(l0)
    b_gi1, b_hn1 = fold(l1)

    L = _pack_layout(H)
    pack = jnp.zeros((L["rows"], PACK_COLS), jnp.float32)
    r = L["w_big"]
    pack = pack.at[r:r + H, 0:G].set(l0["w_hh"])
    pack = pack.at[r:r + H, 128:128 + G].set(l1["w_ih"])
    pack = pack.at[r:r + H, 256:256 + G].set(l1["w_hh"])
    r = L["w_ih0"]
    pack = pack.at[r:r + obs_dims, 0:G].set(l0["w_ih"])
    r = L["b_gi0"]
    pack = pack.at[r:r + B_PAD, 0:G].set(jnp.broadcast_to(b_gi0, (B_PAD, G)))
    r = L["b_gi1"]
    pack = pack.at[r:r + B_PAD, 0:G].set(jnp.broadcast_to(b_gi1, (B_PAD, G)))
    r = L["b_hn0"]
    pack = pack.at[r:r + B_PAD, 0:H].set(jnp.broadcast_to(b_hn0, (B_PAD, H)))
    r = L["b_hn1"]
    pack = pack.at[r:r + B_PAD, 0:H].set(jnp.broadcast_to(b_hn1, (B_PAD, H)))
    r = L["lin_w"]
    pack = pack.at[r:r + H, 0:output_dim].set(params["lin_w"])
    r = L["lin_b"]
    pack = pack.at[r:r + B_PAD, 0:output_dim].set(
        jnp.broadcast_to(params["lin_b"], (B_PAD, output_dim)))
    return jax.block_until_ready(pack)


# ---------------------------------------------------------------------------
# Pure-JAX reference (uses the unfolded PyTorch-style parameters)
# ---------------------------------------------------------------------------
def gru_regression_ref(x, params, hidden_dim):
    B = x.shape[0]
    seq = x
    for layer in params["gru_layers"]:
        w_ih, w_hh = layer["w_ih"], layer["w_hh"]
        b_ih, b_hh = layer["b_ih"], layer["b_hh"]
        H = hidden_dim

        def step(h, x_t, w_ih=w_ih, w_hh=w_hh, b_ih=b_ih, b_hh=b_hh, H=H):
            gi = x_t @ w_ih + b_ih
            gh = h @ w_hh + b_hh
            r = jax.nn.sigmoid(gi[:, :H] + gh[:, :H])
            z = jax.nn.sigmoid(gi[:, H:2 * H] + gh[:, H:2 * H])
            n = jnp.tanh(gi[:, 2 * H:] + r * gh[:, 2 * H:])
            h_new = (1.0 - z) * n + z * h
            return h_new, h_new

        h0 = jnp.zeros((B, H), jnp.float32)
        _, ys = jax.lax.scan(step, h0, jnp.transpose(seq, (1, 0, 2)))
        seq = jnp.transpose(ys, (1, 0, 2))
    last = seq[:, -1, :]
    return jnp.tanh(last @ params["lin_w"] + params["lin_b"])


# ---------------------------------------------------------------------------
if __name__ == "__main__":
    key = jax.random.PRNGKey(0)
    key, kx = jax.random.split(key)
    x = jax.random.normal(kx, (BATCH, SEQ_LEN, OBS_DIMS), jnp.float32)

    params = init_params(key, OBS_DIMS, HIDDEN_DIM, NUM_LAYERS, OUTPUT_DIM)
    w_pack = prepare_kernel_params(params, HIDDEN_DIM, OUTPUT_DIM, OBS_DIMS)

    out = gru_regression_forward(x, w_pack, hidden_dim=HIDDEN_DIM, output_dim=OUTPUT_DIM)
    out = jax.block_until_ready(out)

    ref = gru_regression_ref(x, params, HIDDEN_DIM)
    assert out.shape == (BATCH, OUTPUT_DIM), out.shape
    assert jnp.allclose(out, ref, atol=1e-4, rtol=1e-4), (out, ref)

    print("KERNEL_OK")
</pallas_src>

<mosaic_0001>
module attributes {stable_mosaic.version = 11 : i64} {
  func.func @fused_gru_regression_kernel(%arg0: memref<64x8xf32, #tpu.memory_space<vmem>>, %arg1: memref<112x384xf32, #tpu.memory_space<vmem>>, %arg2: memref<2x3xf32, #tpu.memory_space<vmem>>) attributes {dimension_semantics = [], scalar_prefetch = 0 : i64, scratch_operands = 0 : i64, tpu.core_type = #tpu.core_type<tc>} {
    %c0 = arith.constant 0 : index
    %c0_0 = arith.constant 0 : index
    %0 = vector.load %arg1[%c0, %c0_0] : memref<112x384xf32, #tpu.memory_space<vmem>>, vector<32x384xf32>
    %c32 = arith.constant 32 : index
    %c0_1 = arith.constant 0 : index
    %1 = vector.load %arg1[%c32, %c0_1] : memref<112x384xf32, #tpu.memory_space<vmem>>, vector<8x96xf32>
    %c40 = arith.constant 40 : index
    %c0_2 = arith.constant 0 : index
    %2 = vector.load %arg1[%c40, %c0_2] : memref<112x384xf32, #tpu.memory_space<vmem>>, vector<8x96xf32>
    %c48 = arith.constant 48 : index
    %c0_3 = arith.constant 0 : index
    %3 = vector.load %arg1[%c48, %c0_3] : memref<112x384xf32, #tpu.memory_space<vmem>>, vector<8x96xf32>
    %c56 = arith.constant 56 : index
    %c0_4 = arith.constant 0 : index
    %4 = vector.load %arg1[%c56, %c0_4] : memref<112x384xf32, #tpu.memory_space<vmem>>, vector<8x32xf32>
    %c64 = arith.constant 64 : index
    %c0_5 = arith.constant 0 : index
    %5 = vector.load %arg1[%c64, %c0_5] : memref<112x384xf32, #tpu.memory_space<vmem>>, vector<8x32xf32>
    %c72 = arith.constant 72 : index
    %c0_6 = arith.constant 0 : index
    %6 = vector.load %arg1[%c72, %c0_6] : memref<112x384xf32, #tpu.memory_space<vmem>>, vector<32x3xf32>
    %c104 = arith.constant 104 : index
    %c0_7 = arith.constant 0 : index
    %7 = vector.load %arg1[%c104, %c0_7] : memref<112x384xf32, #tpu.memory_space<vmem>>, vector<8x3xf32>
    %c0_8 = arith.constant 0 : index
    %c0_9 = arith.constant 0 : index
    %8 = vector.load %arg0[%c0_8, %c0_9] : memref<64x8xf32, #tpu.memory_space<vmem>>, vector<64x8xf32>
    %cst = arith.constant dense<0.000000e+00> : vector<64x96xf32>
    %9 = tpu.matmul %8, %1, %cst {dimension_numbers = #tpu.dot_dimension_numbers<[1], [0], [0], [1], [0, 0, 1, 1], [], []>} : vector<64x8xf32>, vector<8x96xf32>, vector<64x96xf32> -> vector<64x96xf32>
    %10 = vector.extract_strided_slice %9 {offsets = [0, 0], sizes = [8, 96], strides = [1, 1]} : vector<64x96xf32> to vector<8x96xf32>
    %11 = arith.addf %10, %2 : vector<8x96xf32>
    %12 = vector.extract_strided_slice %9 {offsets = [8, 0], sizes = [8, 96], strides = [1, 1]} : vector<64x96xf32> to vector<8x96xf32>
    %13 = arith.addf %12, %2 : vector<8x96xf32>
    %14 = vector.extract_strided_slice %9 {offsets = [16, 0], sizes = [8, 96], strides = [1, 1]} : vector<64x96xf32> to vector<8x96xf32>
    %15 = arith.addf %14, %2 : vector<8x96xf32>
    %16 = vector.extract_strided_slice %9 {offsets = [24, 0], sizes = [8, 96], strides = [1, 1]} : vector<64x96xf32> to vector<8x96xf32>
    %17 = arith.addf %16, %2 : vector<8x96xf32>
    %18 = vector.extract_strided_slice %9 {offsets = [32, 0], sizes = [8, 96], strides = [1, 1]} : vector<64x96xf32> to vector<8x96xf32>
    %19 = arith.addf %18, %2 : vector<8x96xf32>
    %20 = vector.extract_strided_slice %9 {offsets = [40, 0], sizes = [8, 96], strides = [1, 1]} : vector<64x96xf32> to vector<8x96xf32>
    %21 = arith.addf %20, %2 : vector<8x96xf32>
    %22 = vector.extract_strided_slice %9 {offsets = [48, 0], sizes = [8, 96], strides = [1, 1]} : vector<64x96xf32> to vector<8x96xf32>
    %23 = arith.addf %22, %2 : vector<8x96xf32>
    %24 = vector.extract_strided_slice %9 {offsets = [56, 0], sizes = [8, 96], strides = [1, 1]} : vector<64x96xf32> to vector<8x96xf32>
    %25 = arith.addf %24, %2 : vector<8x96xf32>
    %cst_10 = arith.constant 0.000000e+00 : f32
    %26 = vector.broadcast %cst_10 : f32 to vector<8x32xf32>
    %cst_11 = arith.constant 0.000000e+00 : f32
    %27 = vector.broadcast %cst_11 : f32 to vector<8x96xf32>
    %28 = vector.extract_strided_slice %11 {offsets = [0, 0], sizes = [8, 64], strides = [1, 1]} : vector<8x96xf32> to vector<8x64xf32>
    %29 = vector.extract_strided_slice %27 {offsets = [0, 0], sizes = [8, 64], strides = [1, 1]} : vector<8x96xf32> to vector<8x64xf32>
    %30 = arith.addf %28, %29 : vector<8x64xf32>
    %31 = arith.negf %30 : vector<8x64xf32>
    %32 = math.exp %31 : vector<8x64xf32>
    %cst_12 = arith.constant 1.000000e+00 : f32
    %33 = vector.broadcast %cst_12 : f32 to vector<8x64xf32>
    %34 = arith.addf %33, %32 : vector<8x64xf32>
    %35 = arith.divf %33, %34 : vector<8x64xf32>
    %36 = vector.extract_strided_slice %35 {offsets = [0, 0], sizes = [8, 32], strides = [1, 1]} : vector<8x64xf32> to vector<8x32xf32>
    %37 = vector.extract_strided_slice %35 {offsets = [0, 32], sizes = [8, 32], strides = [1, 1]} : vector<8x64xf32> to vector<8x32xf32>
    %38 = vector.extract_strided_slice %11 {offsets = [0, 64], sizes = [8, 32], strides = [1, 1]} : vector<8x96xf32> to vector<8x32xf32>
    %39 = vector.extract_strided_slice %27 {offsets = [0, 64], sizes = [8, 32], strides = [1, 1]} : vector<8x96xf32> to vector<8x32xf32>
    %40 = arith.addf %39, %4 : vector<8x32xf32>
    %41 = arith.mulf %36, %40 : vector<8x32xf32>
    %42 = arith.addf %38, %41 : vector<8x32xf32>
    %43 = math.tanh %42 : vector<8x32xf32>
    %cst_13 = arith.constant 1.000000e+00 : f32
    %44 = vector.broadcast %cst_13 : f32 to vector<8x32xf32>
    %45 = arith.subf %44, %37 : vector<8x32xf32>
    %46 = arith.mulf %45, %43 : vector<8x32xf32>
    %47 = arith.mulf %37, %26 : vector<8x32xf32>
    %48 = arith.addf %46, %47 : vector<8x32xf32>
    %49 = tpu.concatenate %48, %26 in 0 : vector<8x32xf32>, vector<8x32xf32> -> vector<16x32xf32>
    %cst_14 = arith.constant dense<0.000000e+00> : vector<16x384xf32>
    %50 = tpu.matmul %49, %0, %cst_14 {dimension_numbers = #tpu.dot_dimension_numbers<[1], [0], [0], [1], [0, 0, 1, 1], [], []>} : vector<16x32xf32>, vector<32x384xf32>, vector<16x384xf32> -> vector<16x384xf32>
    %51 = vector.extract_strided_slice %50 {offsets = [0, 0], sizes = [8, 96], strides = [1, 1]} : vector<16x384xf32> to vector<8x96xf32>
    %52 = vector.extract_strided_slice %50 {offsets = [0, 128], sizes = [8, 96], strides = [1, 1]} : vector<16x384xf32> to vector<8x96xf32>
    %53 = arith.addf %52, %3 : vector<8x96xf32>
    %54 = vector.extract_strided_slice %50 {offsets = [8, 256], sizes = [8, 96], strides = [1, 1]} : vector<16x384xf32> to vector<8x96xf32>
    %55 = vector.extract_strided_slice %53 {offsets = [0, 0], sizes = [8, 64], strides = [1, 1]} : vector<8x96xf32> to vector<8x64xf32>
    %56 = vector.extract_strided_slice %54 {offsets = [0, 0], sizes = [8, 64], strides = [1, 1]} : vector<8x96xf32> to vector<8x64xf32>
    %57 = arith.addf %55, %56 : vector<8x64xf32>
    %58 = arith.negf %57 : vector<8x64xf32>
    %59 = math.exp %58 : vector<8x64xf32>
    %cst_15 = arith.constant 1.000000e+00 : f32
    %60 = vector.broadcast %cst_15 : f32 to vector<8x64xf32>
    %61 = arith.addf %60, %59 : vector<8x64xf32>
    %62 = arith.divf %60, %61 : vector<8x64xf32>
    %63 = vector.extract_strided_slice %62 {offsets = [0, 0], sizes = [8, 32], strides = [1, 1]} : vector<8x64xf32> to vector<8x32xf32>
    %64 = vector.extract_strided_slice %62 {offsets = [0, 32], sizes = [8, 32], strides = [1, 1]} : vector<8x64xf32> to vector<8x32xf32>
    %65 = vector.extract_strided_slice %53 {offsets = [0, 64], sizes = [8, 32], strides = [1, 1]} : vector<8x96xf32> to vector<8x32xf32>
    %66 = vector.extract_strided_slice %54 {offsets = [0, 64], sizes = [8, 32], strides = [1, 1]} : vector<8x96xf32> to vector<8x32xf32>
    %67 = arith.addf %66, %5 : vector<8x32xf32>
    %68 = arith.mulf %63, %67 : vector<8x32xf32>
    %69 = arith.addf %65, %68 : vector<8x32xf32>
    %70 = math.tanh %69 : vector<8x32xf32>
    %cst_16 = arith.constant 1.000000e+00 : f32
    %71 = vector.broadcast %cst_16 : f32 to vector<8x32xf32>
    %72 = arith.subf %71, %64 : vector<8x32xf32>
    %73 = arith.mulf %72, %70 : vector<8x32xf32>
    %74 = arith.mulf %64, %26 : vector<8x32xf32>
    %75 = arith.addf %73, %74 : vector<8x32xf32>
    %76 = vector.extract_strided_slice %13 {offsets = [0, 0], sizes = [8, 64], strides = [1, 1]} : vector<8x96xf32> to vector<8x64xf32>
    %77 = vector.extract_strided_slice %51 {offsets = [0, 0], sizes = [8, 64], strides = [1, 1]} : vector<8x96xf32> to vector<8x64xf32>
    %78 = arith.addf %76, %77 : vector<8x64xf32>
    %79 = arith.negf %78 : vector<8x64xf32>
    %80 = math.exp %79 : vector<8x64xf32>
    %cst_17 = arith.constant 1.000000e+00 : f32
    %81 = vector.broadcast %cst_17 : f32 to vector<8x64xf32>
    %82 = arith.addf %81, %80 : vector<8x64xf32>
    %83 = arith.divf %81, %82 : vector<8x64xf32>
    %84 = vector.extract_strided_slice %83 {offsets = [0, 0], sizes = [8, 32], strides = [1, 1]} : vector<8x64xf32> to vector<8x32xf32>
    %85 = vector.extract_strided_slice %83 {offsets = [0, 32], sizes = [8, 32], strides = [1, 1]} : vector<8x64xf32> to vector<8x32xf32>
    %86 = vector.extract_strided_slice %13 {offsets = [0, 64], sizes = [8, 32], strides = [1, 1]} : vector<8x96xf32> to vector<8x32xf32>
    %87 = vector.extract_strided_slice %51 {offsets = [0, 64], sizes = [8, 32], strides = [1, 1]} : vector<8x96xf32> to vector<8x32xf32>
    %88 = arith.addf %87, %4 : vector<8x32xf32>
    %89 = arith.mulf %84, %88 : vector<8x32xf32>
    %90 = arith.addf %86, %89 : vector<8x32xf32>
    %91 = math.tanh %90 : vector<8x32xf32>
    %cst_18 = arith.constant 1.000000e+00 : f32
    %92 = vector.broadcast %cst_18 : f32 to vector<8x32xf32>
    %93 = arith.subf %92, %85 : vector<8x32xf32>
    %94 = arith.mulf %93, %91 : vector<8x32xf32>
    %95 = arith.mulf %85, %48 : vector<8x32xf32>
    %96 = arith.addf %94, %95 : vector<8x32xf32>
    %97 = tpu.concatenate %96, %75 in 0 : vector<8x32xf32>, vector<8x32xf32> -> vector<16x32xf32>
    %cst_19 = arith.constant dense<0.000000e+00> : vector<16x384xf32>
    %98 = tpu.matmul %97, %0, %cst_19 {dimension_numbers = #tpu.dot_dimension_numbers<[1], [0], [0], [1], [0, 0, 1, 1], [], []>} : vector<16x32xf32>, vector<32x384xf32>, vector<16x384xf32> -> vector<16x384xf32>
    %99 = vector.extract_strided_slice %98 {offsets = [0, 0], sizes = [8, 96], strides = [1, 1]} : vector<16x384xf32> to vector<8x96xf32>
    %100 = vector.extract_strided_slice %98 {offsets = [0, 128], sizes = [8, 96], strides = [1, 1]} : vector<16x384xf32> to vector<8x96xf32>
    %101 = arith.addf %100, %3 : vector<8x96xf32>
    %102 = vector.extract_strided_slice %98 {offsets = [8, 256], sizes = [8, 96], strides = [1, 1]} : vector<16x384xf32> to vector<8x96xf32>
    %103 = vector.extract_strided_slice %101 {offsets = [0, 0], sizes = [8, 64], strides = [1, 1]} : vector<8x96xf32> to vector<8x64xf32>
    %104 = vector.extract_strided_slice %102 {offsets = [0, 0], sizes = [8, 64], strides = [1, 1]} : vector<8x96xf32> to vector<8x64xf32>
    %105 = arith.addf %103, %104 : vector<8x64xf32>
    %106 = arith.negf %105 : vector<8x64xf32>
    %107 = math.exp %106 : vector<8x64xf32>
    %cst_20 = arith.constant 1.000000e+00 : f32
    %108 = vector.broadcast %cst_20 : f32 to vector<8x64xf32>
    %109 = arith.addf %108, %107 : vector<8x64xf32>
    %110 = arith.divf %108, %109 : vector<8x64xf32>
    %111 = vector.extract_strided_slice %110 {offsets = [0, 0], sizes = [8, 32], strides = [1, 1]} : vector<8x64xf32> to vector<8x32xf32>
    %112 = vector.extract_strided_slice %110 {offsets = [0, 32], sizes = [8, 32], strides = [1, 1]} : vector<8x64xf32> to vector<8x32xf32>
    %113 = vector.extract_strided_slice %101 {offsets = [0, 64], sizes = [8, 32], strides = [1, 1]} : vector<8x96xf32> to vector<8x32xf32>
    %114 = vector.extract_strided_slice %102 {offsets = [0, 64], sizes = [8, 32], strides = [1, 1]} : vector<8x96xf32> to vector<8x32xf32>
    %115 = arith.addf %114, %5 : vector<8x32xf32>
    %116 = arith.mulf %111, %115 : vector<8x32xf32>
    %117 = arith.addf %113, %116 : vector<8x32xf32>
    %118 = math.tanh %117 : vector<8x32xf32>
    %cst_21 = arith.constant 1.000000e+00 : f32
    %119 = vector.broadcast %cst_21 : f32 to vector<8x32xf32>
    %120 = arith.subf %119, %112 : vector<8x32xf32>
    %121 = arith.mulf %120, %118 : vector<8x32xf32>
    %122 = arith.mulf %112, %75 : vector<8x32xf32>
    %123 = arith.addf %121, %122 : vector<8x32xf32>
    %124 = vector.extract_strided_slice %15 {offsets = [0, 0], sizes = [8, 64], strides = [1, 1]} : vector<8x96xf32> to vector<8x64xf32>
    %125 = vector.extract_strided_slice %99 {offsets = [0, 0], sizes = [8, 64], strides = [1, 1]} : vector<8x96xf32> to vector<8x64xf32>
    %126 = arith.addf %124, %125 : vector<8x64xf32>
    %127 = arith.negf %126 : vector<8x64xf32>
    %128 = math.exp %127 : vector<8x64xf32>
    %cst_22 = arith.constant 1.000000e+00 : f32
    %129 = vector.broadcast %cst_22 : f32 to vector<8x64xf32>
    %130 = arith.addf %129, %128 : vector<8x64xf32>
    %131 = arith.divf %129, %130 : vector<8x64xf32>
    %132 = vector.extract_strided_slice %131 {offsets = [0, 0], sizes = [8, 32], strides = [1, 1]} : vector<8x64xf32> to vector<8x32xf32>
    %133 = vector.extract_strided_slice %131 {offsets = [0, 32], sizes = [8, 32], strides = [1, 1]} : vector<8x64xf32> to vector<8x32xf32>
    %134 = vector.extract_strided_slice %15 {offsets = [0, 64], sizes = [8, 32], strides = [1, 1]} : vector<8x96xf32> to vector<8x32xf32>
    %135 = vector.extract_strided_slice %99 {offsets = [0, 64], sizes = [8, 32], strides = [1, 1]} : vector<8x96xf32> to vector<8x32xf32>
    %136 = arith.addf %135, %4 : vector<8x32xf32>
    %137 = arith.mulf %132, %136 : vector<8x32xf32>
    %138 = arith.addf %134, %137 : vector<8x32xf32>
    %139 = math.tanh %138 : vector<8x32xf32>
    %cst_23 = arith.constant 1.000000e+00 : f32
    %140 = vector.broadcast %cst_23 : f32 to vector<8x32xf32>
    %141 = arith.subf %140, %133 : vector<8x32xf32>
    %142 = arith.mulf %141, %139 : vector<8x32xf32>
    %143 = arith.mulf %133, %96 : vector<8x32xf32>
    %144 = arith.addf %142, %143 : vector<8x32xf32>
    %145 = tpu.concatenate %144, %123 in 0 : vector<8x32xf32>, vector<8x32xf32> -> vector<16x32xf32>
    %cst_24 = arith.constant dense<0.000000e+00> : vector<16x384xf32>
    %146 = tpu.matmul %145, %0, %cst_24 {dimension_numbers = #tpu.dot_dimension_numbers<[1], [0], [0], [1], [0, 0, 1, 1], [], []>} : vector<16x32xf32>, vector<32x384xf32>, vector<16x384xf32> -> vector<16x384xf32>
    %147 = vector.extract_strided_slice %146 {offsets = [0, 0], sizes = [8, 96], strides = [1, 1]} : vector<16x384xf32> to vector<8x96xf32>
    %148 = vector.extract_strided_slice %146 {offsets = [0, 128], sizes = [8, 96], strides = [1, 1]} : vector<16x384xf32> to vector<8x96xf32>
    %149 = arith.addf %148, %3 : vector<8x96xf32>
    %150 = vector.extract_strided_slice %146 {offsets = [8, 256], sizes = [8, 96], strides = [1, 1]} : vector<16x384xf32> to vector<8x96xf32>
    %151 = vector.extract_strided_slice %149 {offsets = [0, 0], sizes = [8, 64], strides = [1, 1]} : vector<8x96xf32> to vector<8x64xf32>
    %152 = vector.extract_strided_slice %150 {offsets = [0, 0], sizes = [8, 64], strides = [1, 1]} : vector<8x96xf32> to vector<8x64xf32>
    %153 = arith.addf %151, %152 : vector<8x64xf32>
    %154 = arith.negf %153 : vector<8x64xf32>
    %155 = math.exp %154 : vector<8x64xf32>
    %cst_25 = arith.constant 1.000000e+00 : f32
    %156 = vector.broadcast %cst_25 : f32 to vector<8x64xf32>
    %157 = arith.addf %156, %155 : vector<8x64xf32>
    %158 = arith.divf %156, %157 : vector<8x64xf32>
    %159 = vector.extract_strided_slice %158 {offsets = [0, 0], sizes = [8, 32], strides = [1, 1]} : vector<8x64xf32> to vector<8x32xf32>
    %160 = vector.extract_strided_slice %158 {offsets = [0, 32], sizes = [8, 32], strides = [1, 1]} : vector<8x64xf32> to vector<8x32xf32>
    %161 = vector.extract_strided_slice %149 {offsets = [0, 64], sizes = [8, 32], strides = [1, 1]} : vector<8x96xf32> to vector<8x32xf32>
    %162 = vector.extract_strided_slice %150 {offsets = [0, 64], sizes = [8, 32], strides = [1, 1]} : vector<8x96xf32> to vector<8x32xf32>
    %163 = arith.addf %162, %5 : vector<8x32xf32>
    %164 = arith.mulf %159, %163 : vector<8x32xf32>
    %165 = arith.addf %161, %164 : vector<8x32xf32>
    %166 = math.tanh %165 : vector<8x32xf32>
    %cst_26 = arith.constant 1.000000e+00 : f32
    %167 = vector.broadcast %cst_26 : f32 to vector<8x32xf32>
    %168 = arith.subf %167, %160 : vector<8x32xf32>
    %169 = arith.mulf %168, %166 : vector<8x32xf32>
    %170 = arith.mulf %160, %123 : vector<8x32xf32>
    %171 = arith.addf %169, %170 : vector<8x32xf32>
    %172 = vector.extract_strided_slice %17 {offsets = [0, 0], sizes = [8, 64], strides = [1, 1]} : vector<8x96xf32> to vector<8x64xf32>
    %173 = vector.extract_strided_slice %147 {offsets = [0, 0], sizes = [8, 64], strides = [1, 1]} : vector<8x96xf32> to vector<8x64xf32>
    %174 = arith.addf %172, %173 : vector<8x64xf32>
    %175 = arith.negf %174 : vector<8x64xf32>
    %176 = math.exp %175 : vector<8x64xf32>
    %cst_27 = arith.constant 1.000000e+00 : f32
    %177 = vector.broadcast %cst_27 : f32 to vector<8x64xf32>
    %178 = arith.addf %177, %176 : vector<8x64xf32>
    %179 = arith.divf %177, %178 : vector<8x64xf32>
    %180 = vector.extract_strided_slice %179 {offsets = [0, 0], sizes = [8, 32], strides = [1, 1]} : vector<8x64xf32> to vector<8x32xf32>
    %181 = vector.extract_strided_slice %179 {offsets = [0, 32], sizes = [8, 32], strides = [1, 1]} : vector<8x64xf32> to vector<8x32xf32>
    %182 = vector.extract_strided_slice %17 {offsets = [0, 64], sizes = [8, 32], strides = [1, 1]} : vector<8x96xf32> to vector<8x32xf32>
    %183 = vector.extract_strided_slice %147 {offsets = [0, 64], sizes = [8, 32], strides = [1, 1]} : vector<8x96xf32> to vector<8x32xf32>
    %184 = arith.addf %183, %4 : vector<8x32xf32>
    %185 = arith.mulf %180, %184 : vector<8x32xf32>
    %186 = arith.addf %182, %185 : vector<8x32xf32>
    %187 = math.tanh %186 : vector<8x32xf32>
    %cst_28 = arith.constant 1.000000e+00 : f32
    %188 = vector.broadcast %cst_28 : f32 to vector<8x32xf32>
    %189 = arith.subf %188, %181 : vector<8x32xf32>
    %190 = arith.mulf %189, %187 : vector<8x32xf32>
    %191 = arith.mulf %181, %144 : vector<8x32xf32>
    %192 = arith.addf %190, %191 : vector<8x32xf32>
    %193 = tpu.concatenate %192, %171 in 0 : vector<8x32xf32>, vector<8x32xf32> -> vector<16x32xf32>
    %cst_29 = arith.constant dense<0.000000e+00> : vector<16x384xf32>
    %194 = tpu.matmul %193, %0, %cst_29 {dimension_numbers = #tpu.dot_dimension_numbers<[1], [0], [0], [1], [0, 0, 1, 1], [], []>} : vector<16x32xf32>, vector<32x384xf32>, vector<16x384xf32> -> vector<16x384xf32>
    %195 = vector.extract_strided_slice %194 {offsets = [0, 0], sizes = [8, 96], strides = [1, 1]} : vector<16x384xf32> to vector<8x96xf32>
    %196 = vector.extract_strided_slice %194 {offsets = [0, 128], sizes = [8, 96], strides = [1, 1]} : vector<16x384xf32> to vector<8x96xf32>
    %197 = arith.addf %196, %3 : vector<8x96xf32>
    %198 = vector.extract_strided_slice %194 {offsets = [8, 256], sizes = [8, 96], strides = [1, 1]} : vector<16x384xf32> to vector<8x96xf32>
    %199 = vector.extract_strided_slice %197 {offsets = [0, 0], sizes = [8, 64], strides = [1, 1]} : vector<8x96xf32> to vector<8x64xf32>
    %200 = vector.extract_strided_slice %198 {offsets = [0, 0], sizes = [8, 64], strides = [1, 1]} : vector<8x96xf32> to vector<8x64xf32>
    %201 = arith.addf %199, %200 : vector<8x64xf32>
    %202 = arith.negf %201 : vector<8x64xf32>
    %203 = math.exp %202 : vector<8x64xf32>
    %cst_30 = arith.constant 1.000000e+00 : f32
    %204 = vector.broadcast %cst_30 : f32 to vector<8x64xf32>
    %205 = arith.addf %204, %203 : vector<8x64xf32>
    %206 = arith.divf %204, %205 : vector<8x64xf32>
    %207 = vector.extract_strided_slice %206 {offsets = [0, 0], sizes = [8, 32], strides = [1, 1]} : vector<8x64xf32> to vector<8x32xf32>
    %208 = vector.extract_strided_slice %206 {offsets = [0, 32], sizes = [8, 32], strides = [1, 1]} : vector<8x64xf32> to vector<8x32xf32>
    %209 = vector.extract_strided_slice %197 {offsets = [0, 64], sizes = [8, 32], strides = [1, 1]} : vector<8x96xf32> to vector<8x32xf32>
    %210 = vector.extract_strided_slice %198 {offsets = [0, 64], sizes = [8, 32], strides = [1, 1]} : vector<8x96xf32> to vector<8x32xf32>
    %211 = arith.addf %210, %5 : vector<8x32xf32>
    %212 = arith.mulf %207, %211 : vector<8x32xf32>
    %213 = arith.addf %209, %212 : vector<8x32xf32>
    %214 = math.tanh %213 : vector<8x32xf32>
    %cst_31 = arith.constant 1.000000e+00 : f32
    %215 = vector.broadcast %cst_31 : f32 to vector<8x32xf32>
    %216 = arith.subf %215, %208 : vector<8x32xf32>
    %217 = arith.mulf %216, %214 : vector<8x32xf32>
    %218 = arith.mulf %208, %171 : vector<8x32xf32>
    %219 = arith.addf %217, %218 : vector<8x32xf32>
    %220 = vector.extract_strided_slice %19 {offsets = [0, 0], sizes = [8, 64], strides = [1, 1]} : vector<8x96xf32> to vector<8x64xf32>
    %221 = vector.extract_strided_slice %195 {offsets = [0, 0], sizes = [8, 64], strides = [1, 1]} : vector<8x96xf32> to vector<8x64xf32>
    %222 = arith.addf %220, %221 : vector<8x64xf32>
    %223 = arith.negf %222 : vector<8x64xf32>
    %224 = math.exp %223 : vector<8x64xf32>
    %cst_32 = arith.constant 1.000000e+00 : f32
    %225 = vector.broadcast %cst_32 : f32 to vector<8x64xf32>
    %226 = arith.addf %225, %224 : vector<8x64xf32>
    %227 = arith.divf %225, %226 : vector<8x64xf32>
    %228 = vector.extract_strided_slice %227 {offsets = [0, 0], sizes = [8, 32], strides = [1, 1]} : vector<8x64xf32> to vector<8x32xf32>
    %229 = vector.extract_strided_slice %227 {offsets = [0, 32], sizes = [8, 32], strides = [1, 1]} : vector<8x64xf32> to vector<8x32xf32>
    %230 = vector.extract_strided_slice %19 {offsets = [0, 64], sizes = [8, 32], strides = [1, 1]} : vector<8x96xf32> to vector<8x32xf32>
    %231 = vector.extract_strided_slice %195 {offsets = [0, 64], sizes = [8, 32], strides = [1, 1]} : vector<8x96xf32> to vector<8x32xf32>
    %232 = arith.addf %231, %4 : vector<8x32xf32>
    %233 = arith.mulf %228, %232 : vector<8x32xf32>
    %234 = arith.addf %230, %233 : vector<8x32xf32>
    %235 = math.tanh %234 : vector<8x32xf32>
    %cst_33 = arith.constant 1.000000e+00 : f32
    %236 = vector.broadcast %cst_33 : f32 to vector<8x32xf32>
    %237 = arith.subf %236, %229 : vector<8x32xf32>
    %238 = arith.mulf %237, %235 : vector<8x32xf32>
    %239 = arith.mulf %229, %192 : vector<8x32xf32>
    %240 = arith.addf %238, %239 : vector<8x32xf32>
    %241 = tpu.concatenate %240, %219 in 0 : vector<8x32xf32>, vector<8x32xf32> -> vector<16x32xf32>
    %cst_34 = arith.constant dense<0.000000e+00> : vector<16x384xf32>
    %242 = tpu.matmul %241, %0, %cst_34 {dimension_numbers = #tpu.dot_dimension_numbers<[1], [0], [0], [1], [0, 0, 1, 1], [], []>} : vector<16x32xf32>, vector<32x384xf32>, vector<16x384xf32> -> vector<16x384xf32>
    %243 = vector.extract_strided_slice %242 {offsets = [0, 0], sizes = [8, 96], strides = [1, 1]} : vector<16x384xf32> to vector<8x96xf32>
    %244 = vector.extract_strided_slice %242 {offsets = [0, 128], sizes = [8, 96], strides = [1, 1]} : vector<16x384xf32> to vector<8x96xf32>
    %245 = arith.addf %244, %3 : vector<8x96xf32>
    %246 = vector.extract_strided_slice %242 {offsets = [8, 256], sizes = [8, 96], strides = [1, 1]} : vector<16x384xf32> to vector<8x96xf32>
    %247 = vector.extract_strided_slice %245 {offsets = [0, 0], sizes = [8, 64], strides = [1, 1]} : vector<8x96xf32> to vector<8x64xf32>
    %248 = vector.extract_strided_slice %246 {offsets = [0, 0], sizes = [8, 64], strides = [1, 1]} : vector<8x96xf32> to vector<8x64xf32>
    %249 = arith.addf %247, %248 : vector<8x64xf32>
    %250 = arith.negf %249 : vector<8x64xf32>
    %251 = math.exp %250 : vector<8x64xf32>
    %cst_35 = arith.constant 1.000000e+00 : f32
    %252 = vector.broadcast %cst_35 : f32 to vector<8x64xf32>
    %253 = arith.addf %252, %251 : vector<8x64xf32>
    %254 = arith.divf %252, %253 : vector<8x64xf32>
    %255 = vector.extract_strided_slice %254 {offsets = [0, 0], sizes = [8, 32], strides = [1, 1]} : vector<8x64xf32> to vector<8x32xf32>
    %256 = vector.extract_strided_slice %254 {offsets = [0, 32], sizes = [8, 32], strides = [1, 1]} : vector<8x64xf32> to vector<8x32xf32>
    %257 = vector.extract_strided_slice %245 {offsets = [0, 64], sizes = [8, 32], strides = [1, 1]} : vector<8x96xf32> to vector<8x32xf32>
    %258 = vector.extract_strided_slice %246 {offsets = [0, 64], sizes = [8, 32], strides = [1, 1]} : vector<8x96xf32> to vector<8x32xf32>
    %259 = arith.addf %258, %5 : vector<8x32xf32>
    %260 = arith.mulf %255, %259 : vector<8x32xf32>
    %261 = arith.addf %257, %260 : vector<8x32xf32>
    %262 = math.tanh %261 : vector<8x32xf32>
    %cst_36 = arith.constant 1.000000e+00 : f32
    %263 = vector.broadcast %cst_36 : f32 to vector<8x32xf32>
    %264 = arith.subf %263, %256 : vector<8x32xf32>
    %265 = arith.mulf %264, %262 : vector<8x32xf32>
    %266 = arith.mulf %256, %219 : vector<8x32xf32>
    %267 = arith.addf %265, %266 : vector<8x32xf32>
    %268 = vector.extract_strided_slice %21 {offsets = [0, 0], sizes = [8, 64], strides = [1, 1]} : vector<8x96xf32> to vector<8x64xf32>
    %269 = vector.extract_strided_slice %243 {offsets = [0, 0], sizes = [8, 64], strides = [1, 1]} : vector<8x96xf32> to vector<8x64xf32>
    %270 = arith.addf %268, %269 : vector<8x64xf32>
    %271 = arith.negf %270 : vector<8x64xf32>
    %272 = math.exp %271 : vector<8x64xf32>
    %cst_37 = arith.constant 1.000000e+00 : f32
    %273 = vector.broadcast %cst_37 : f32 to vector<8x64xf32>
    %274 = arith.addf %273, %272 : vector<8x64xf32>
    %275 = arith.divf %273, %274 : vector<8x64xf32>
    %276 = vector.extract_strided_slice %275 {offsets = [0, 0], sizes = [8, 32], strides = [1, 1]} : vector<8x64xf32> to vector<8x32xf32>
    %277 = vector.extract_strided_slice %275 {offsets = [0, 32], sizes = [8, 32], strides = [1, 1]} : vector<8x64xf32> to vector<8x32xf32>
    %278 = vector.extract_strided_slice %21 {offsets = [0, 64], sizes = [8, 32], strides = [1, 1]} : vector<8x96xf32> to vector<8x32xf32>
    %279 = vector.extract_strided_slice %243 {offsets = [0, 64], sizes = [8, 32], strides = [1, 1]} : vector<8x96xf32> to vector<8x32xf32>
    %280 = arith.addf %279, %4 : vector<8x32xf32>
    %281 = arith.mulf %276, %280 : vector<8x32xf32>
    %282 = arith.addf %278, %281 : vector<8x32xf32>
    %283 = math.tanh %282 : vector<8x32xf32>
    %cst_38 = arith.constant 1.000000e+00 : f32
    %284 = vector.broadcast %cst_38 : f32 to vector<8x32xf32>
    %285 = arith.subf %284, %277 : vector<8x32xf32>
    %286 = arith.mulf %285, %283 : vector<8x32xf32>
    %287 = arith.mulf %277, %240 : vector<8x32xf32>
    %288 = arith.addf %286, %287 : vector<8x32xf32>
    %289 = tpu.concatenate %288, %267 in 0 : vector<8x32xf32>, vector<8x32xf32> -> vector<16x32xf32>
    %cst_39 = arith.constant dense<0.000000e+00> : vector<16x384xf32>
    %290 = tpu.matmul %289, %0, %cst_39 {dimension_numbers = #tpu.dot_dimension_numbers<[1], [0], [0], [1], [0, 0, 1, 1], [], []>} : vector<16x32xf32>, vector<32x384xf32>, vector<16x384xf32> -> vector<16x384xf32>
    %291 = vector.extract_strided_slice %290 {offsets = [0, 0], sizes = [8, 96], strides = [1, 1]} : vector<16x384xf32> to vector<8x96xf32>
    %292 = vector.extract_strided_slice %290 {offsets = [0, 128], sizes = [8, 96], strides = [1, 1]} : vector<16x384xf32> to vector<8x96xf32>
    %293 = arith.addf %292, %3 : vector<8x96xf32>
    %294 = vector.extract_strided_slice %290 {offsets = [8, 256], sizes = [8, 96], strides = [1, 1]} : vector<16x384xf32> to vector<8x96xf32>
    %295 = vector.extract_strided_slice %293 {offsets = [0, 0], sizes = [8, 64], strides = [1, 1]} : vector<8x96xf32> to vector<8x64xf32>
    %296 = vector.extract_strided_slice %294 {offsets = [0, 0], sizes = [8, 64], strides = [1, 1]} : vector<8x96xf32> to vector<8x64xf32>
    %297 = arith.addf %295, %296 : vector<8x64xf32>
    %298 = arith.negf %297 : vector<8x64xf32>
    %299 = math.exp %298 : vector<8x64xf32>
    %cst_40 = arith.constant 1.000000e+00 : f32
    %300 = vector.broadcast %cst_40 : f32 to vector<8x64xf32>
    %301 = arith.addf %300, %299 : vector<8x64xf32>
    %302 = arith.divf %300, %301 : vector<8x64xf32>
    %303 = vector.extract_strided_slice %302 {offsets = [0, 0], sizes = [8, 32], strides = [1, 1]} : vector<8x64xf32> to vector<8x32xf32>
    %304 = vector.extract_strided_slice %302 {offsets = [0, 32], sizes = [8, 32], strides = [1, 1]} : vector<8x64xf32> to vector<8x32xf32>
    %305 = vector.extract_strided_slice %293 {offsets = [0, 64], sizes = [8, 32], strides = [1, 1]} : vector<8x96xf32> to vector<8x32xf32>
    %306 = vector.extract_strided_slice %294 {offsets = [0, 64], sizes = [8, 32], strides = [1, 1]} : vector<8x96xf32> to vector<8x32xf32>
    %307 = arith.addf %306, %5 : vector<8x32xf32>
    %308 = arith.mulf %303, %307 : vector<8x32xf32>
    %309 = arith.addf %305, %308 : vector<8x32xf32>
    %310 = math.tanh %309 : vector<8x32xf32>
    %cst_41 = arith.constant 1.000000e+00 : f32
    %311 = vector.broadcast %cst_41 : f32 to vector<8x32xf32>
    %312 = arith.subf %311, %304 : vector<8x32xf32>
    %313 = arith.mulf %312, %310 : vector<8x32xf32>
    %314 = arith.mulf %304, %267 : vector<8x32xf32>
    %315 = arith.addf %313, %314 : vector<8x32xf32>
    %316 = vector.extract_strided_slice %23 {offsets = [0, 0], sizes = [8, 64], strides = [1, 1]} : vector<8x96xf32> to vector<8x64xf32>
    %317 = vector.extract_strided_slice %291 {offsets = [0, 0], sizes = [8, 64], strides = [1, 1]} : vector<8x96xf32> to vector<8x64xf32>
    %318 = arith.addf %316, %317 : vector<8x64xf32>
    %319 = arith.negf %318 : vector<8x64xf32>
    %320 = math.exp %319 : vector<8x64xf32>
    %cst_42 = arith.constant 1.000000e+00 : f32
    %321 = vector.broadcast %cst_42 : f32 to vector<8x64xf32>
    %322 = arith.addf %321, %320 : vector<8x64xf32>
    %323 = arith.divf %321, %322 : vector<8x64xf32>
    %324 = vector.extract_strided_slice %323 {offsets = [0, 0], sizes = [8, 32], strides = [1, 1]} : vector<8x64xf32> to vector<8x32xf32>
    %325 = vector.extract_strided_slice %323 {offsets = [0, 32], sizes = [8, 32], strides = [1, 1]} : vector<8x64xf32> to vector<8x32xf32>
    %326 = vector.extract_strided_slice %23 {offsets = [0, 64], sizes = [8, 32], strides = [1, 1]} : vector<8x96xf32> to vector<8x32xf32>
    %327 = vector.extract_strided_slice %291 {offsets = [0, 64], sizes = [8, 32], strides = [1, 1]} : vector<8x96xf32> to vector<8x32xf32>
    %328 = arith.addf %327, %4 : vector<8x32xf32>
    %329 = arith.mulf %324, %328 : vector<8x32xf32>
    %330 = arith.addf %326, %329 : vector<8x32xf32>
    %331 = math.tanh %330 : vector<8x32xf32>
    %cst_43 = arith.constant 1.000000e+00 : f32
    %332 = vector.broadcast %cst_43 : f32 to vector<8x32xf32>
    %333 = arith.subf %332, %325 : vector<8x32xf32>
    %334 = arith.mulf %333, %331 : vector<8x32xf32>
    %335 = arith.mulf %325, %288 : vector<8x32xf32>
    %336 = arith.addf %334, %335 : vector<8x32xf32>
    %337 = tpu.concatenate %336, %315 in 0 : vector<8x32xf32>, vector<8x32xf32> -> vector<16x32xf32>
    %cst_44 = arith.constant dense<0.000000e+00> : vector<16x384xf32>
    %338 = tpu.matmul %337, %0, %cst_44 {dimension_numbers = #tpu.dot_dimension_numbers<[1], [0], [0], [1], [0, 0, 1, 1], [], []>} : vector<16x32xf32>, vector<32x384xf32>, vector<16x384xf32> -> vector<16x384xf32>
    %339 = vector.extract_strided_slice %338 {offsets = [0, 0], sizes = [8, 96], strides = [1, 1]} : vector<16x384xf32> to vector<8x96xf32>
    %340 = vector.extract_strided_slice %338 {offsets = [0, 128], sizes = [8, 96], strides = [1, 1]} : vector<16x384xf32> to vector<8x96xf32>
    %341 = arith.addf %340, %3 : vector<8x96xf32>
    %342 = vector.extract_strided_slice %338 {offsets = [8, 256], sizes = [8, 96], strides = [1, 1]} : vector<16x384xf32> to vector<8x96xf32>
    %343 = vector.extract_strided_slice %341 {offsets = [0, 0], sizes = [8, 64], strides = [1, 1]} : vector<8x96xf32> to vector<8x64xf32>
    %344 = vector.extract_strided_slice %342 {offsets = [0, 0], sizes = [8, 64], strides = [1, 1]} : vector<8x96xf32> to vector<8x64xf32>
    %345 = arith.addf %343, %344 : vector<8x64xf32>
    %346 = arith.negf %345 : vector<8x64xf32>
    %347 = math.exp %346 : vector<8x64xf32>
    %cst_45 = arith.constant 1.000000e+00 : f32
    %348 = vector.broadcast %cst_45 : f32 to vector<8x64xf32>
    %349 = arith.addf %348, %347 : vector<8x64xf32>
    %350 = arith.divf %348, %349 : vector<8x64xf32>
    %351 = vector.extract_strided_slice %350 {offsets = [0, 0], sizes = [8, 32], strides = [1, 1]} : vector<8x64xf32> to vector<8x32xf32>
    %352 = vector.extract_strided_slice %350 {offsets = [0, 32], sizes = [8, 32], strides = [1, 1]} : vector<8x64xf32> to vector<8x32xf32>
    %353 = vector.extract_strided_slice %341 {offsets = [0, 64], sizes = [8, 32], strides = [1, 1]} : vector<8x96xf32> to vector<8x32xf32>
    %354 = vector.extract_strided_slice %342 {offsets = [0, 64], sizes = [8, 32], strides = [1, 1]} : vector<8x96xf32> to vector<8x32xf32>
    %355 = arith.addf %354, %5 : vector<8x32xf32>
    %356 = arith.mulf %351, %355 : vector<8x32xf32>
    %357 = arith.addf %353, %356 : vector<8x32xf32>
    %358 = math.tanh %357 : vector<8x32xf32>
    %cst_46 = arith.constant 1.000000e+00 : f32
    %359 = vector.broadcast %cst_46 : f32 to vector<8x32xf32>
    %360 = arith.subf %359, %352 : vector<8x32xf32>
    %361 = arith.mulf %360, %358 : vector<8x32xf32>
    %362 = arith.mulf %352, %315 : vector<8x32xf32>
    %363 = arith.addf %361, %362 : vector<8x32xf32>
    %364 = vector.extract_strided_slice %25 {offsets = [0, 0], sizes = [8, 64], strides = [1, 1]} : vector<8x96xf32> to vector<8x64xf32>
    %365 = vector.extract_strided_slice %339 {offsets = [0, 0], sizes = [8, 64], strides = [1, 1]} : vector<8x96xf32> to vector<8x64xf32>
    %366 = arith.addf %364, %365 : vector<8x64xf32>
    %367 = arith.negf %366 : vector<8x64xf32>
    %368 = math.exp %367 : vector<8x64xf32>
    %cst_47 = arith.constant 1.000000e+00 : f32
    %369 = vector.broadcast %cst_47 : f32 to vector<8x64xf32>
    %370 = arith.addf %369, %368 : vector<8x64xf32>
    %371 = arith.divf %369, %370 : vector<8x64xf32>
    %372 = vector.extract_strided_slice %371 {offsets = [0, 0], sizes = [8, 32], strides = [1, 1]} : vector<8x64xf32> to vector<8x32xf32>
    %373 = vector.extract_strided_slice %371 {offsets = [0, 32], sizes = [8, 32], strides = [1, 1]} : vector<8x64xf32> to vector<8x32xf32>
    %374 = vector.extract_strided_slice %25 {offsets = [0, 64], sizes = [8, 32], strides = [1, 1]} : vector<8x96xf32> to vector<8x32xf32>
    %375 = vector.extract_strided_slice %339 {offsets = [0, 64], sizes = [8, 32], strides = [1, 1]} : vector<8x96xf32> to vector<8x32xf32>
    %376 = arith.addf %375, %4 : vector<8x32xf32>
    %377 = arith.mulf %372, %376 : vector<8x32xf32>
    %378 = arith.addf %374, %377 : vector<8x32xf32>
    %379 = math.tanh %378 : vector<8x32xf32>
    %cst_48 = arith.constant 1.000000e+00 : f32
    %380 = vector.broadcast %cst_48 : f32 to vector<8x32xf32>
    %381 = arith.subf %380, %373 : vector<8x32xf32>
    %382 = arith.mulf %381, %379 : vector<8x32xf32>
    %383 = arith.mulf %373, %336 : vector<8x32xf32>
    %384 = arith.addf %382, %383 : vector<8x32xf32>
    %385 = tpu.concatenate %384, %363 in 0 : vector<8x32xf32>, vector<8x32xf32> -> vector<16x32xf32>
    %cst_49 = arith.constant dense<0.000000e+00> : vector<16x384xf32>
    %386 = tpu.matmul %385, %0, %cst_49 {dimension_numbers = #tpu.dot_dimension_numbers<[1], [0], [0], [1], [0, 0, 1, 1], [], []>} : vector<16x32xf32>, vector<32x384xf32>, vector<16x384xf32> -> vector<16x384xf32>
    %387 = vector.extract_strided_slice %386 {offsets = [0, 128], sizes = [8, 96], strides = [1, 1]} : vector<16x384xf32> to vector<8x96xf32>
    %388 = arith.addf %387, %3 : vector<8x96xf32>
    %389 = vector.extract_strided_slice %386 {offsets = [8, 256], sizes = [8, 96], strides = [1, 1]} : vector<16x384xf32> to vector<8x96xf32>
    %390 = vector.extract_strided_slice %388 {offsets = [0, 0], sizes = [8, 64], strides = [1, 1]} : vector<8x96xf32> to vector<8x64xf32>
    %391 = vector.extract_strided_slice %389 {offsets = [0, 0], sizes = [8, 64], strides = [1, 1]} : vector<8x96xf32> to vector<8x64xf32>
    %392 = arith.addf %390, %391 : vector<8x64xf32>
    %393 = arith.negf %392 : vector<8x64xf32>
    %394 = math.exp %393 : vector<8x64xf32>
    %cst_50 = arith.constant 1.000000e+00 : f32
    %395 = vector.broadcast %cst_50 : f32 to vector<8x64xf32>
    %396 = arith.addf %395, %394 : vector<8x64xf32>
    %397 = arith.divf %395, %396 : vector<8x64xf32>
    %398 = vector.extract_strided_slice %397 {offsets = [0, 0], sizes = [8, 32], strides = [1, 1]} : vector<8x64xf32> to vector<8x32xf32>
    %399 = vector.extract_strided_slice %397 {offsets = [0, 32], sizes = [8, 32], strides = [1, 1]} : vector<8x64xf32> to vector<8x32xf32>
    %400 = vector.extract_strided_slice %388 {offsets = [0, 64], sizes = [8, 32], strides = [1, 1]} : vector<8x96xf32> to vector<8x32xf32>
    %401 = vector.extract_strided_slice %389 {offsets = [0, 64], sizes = [8, 32], strides = [1, 1]} : vector<8x96xf32> to vector<8x32xf32>
    %402 = arith.addf %401, %5 : vector<8x32xf32>
    %403 = arith.mulf %398, %402 : vector<8x32xf32>
    %404 = arith.addf %400, %403 : vector<8x32xf32>
    %405 = math.tanh %404 : vector<8x32xf32>
    %cst_51 = arith.constant 1.000000e+00 : f32
    %406 = vector.broadcast %cst_51 : f32 to vector<8x32xf32>
    %407 = arith.subf %406, %399 : vector<8x32xf32>
    %408 = arith.mulf %407, %405 : vector<8x32xf32>
    %409 = arith.mulf %399, %363 : vector<8x32xf32>
    %410 = arith.addf %408, %409 : vector<8x32xf32>
    %cst_52 = arith.constant dense<0.000000e+00> : vector<8x3xf32>
    %411 = tpu.matmul %410, %6, %cst_52 {dimension_numbers = #tpu.dot_dimension_numbers<[1], [0], [0], [1], [0, 0, 1, 1], [], []>} : vector<8x32xf32>, vector<32x3xf32>, vector<8x3xf32> -> vector<8x3xf32>
    %412 = arith.addf %411, %7 : vector<8x3xf32>
    %413 = math.tanh %412 : vector<8x3xf32>
    %414 = vector.extract_strided_slice %413 {offsets = [0, 0], sizes = [2, 3], strides = [1, 1]} : vector<8x3xf32> to vector<2x3xf32>
    %c0_53 = arith.constant 0 : index
    %c0_54 = arith.constant 0 : index
    %415 = vector.load %arg2[%c0_53, %c0_54] : memref<2x3xf32, #tpu.memory_space<vmem>>, vector<2x3xf32>
    tpu.vector_store %arg2[%c0_53, %c0_54], %414 {strides = array<i32>} : memref<2x3xf32, #tpu.memory_space<vmem>>, vector<2x3xf32>,
    return
  }
}

</mosaic_0001>

<bundles_post_ra>
// kernel: gru_regression_forward.1
= control target key start
LH: loop header
LB: loop body
LE: loop exit
PB: predicated region body
PF: predicated region fallthrough
CT: control target
= control target key end

     0   :  { %7 = vsyncpa [#allocation3], 0  ;;  %s2906_s0 = inlined_call_operand.vmem [shape: f32[64,8], index: 0, kind: input, shape index: {}]   ;;  %s2907_s1 = inlined_call_operand.hbm [shape: f32[112,384], index: 1, kind: input, shape index: {}]   ;;  %s2908_s2 = inlined_call_operand.hbm [shape: f32[2,3], index: 2, kind: output, shape index: {}]  }
   0x1   :  { %8 = vsyncpa [#allocation4], 0  ;;  %s2525_s9 = smov [#allocation2]   ;;  %s2477_s13 = scalar_lea.hbm %s2907_s1, 5376 }
   0x2   :  { %s16_s10 = sshll.u32 %s2525_s9, 4  ;;  %p2478_p0 = scmp.ne.s32.totalorder %s2907_s1, %s2477_s13  ;;  %s17_s10 = int_to_ptr.vmem [resolvable:$true] %s16_s10 }
   0x3   :  { %p2481_p1 = scmp.lt.u32.totalorder %s2477_s13, %s2907_s1 }
   0x5   :  { %p2483_p2 = pnand %p2481_p1, %p2478_p0 }
   0x7   :  { %2486 = shalt.err (!%p2483_p2)
}
   0x8   :  { %s2487_s18 = scalar_lea.vmem %s17_s10, 5376  ;;  %p2492_p4 = scmp.lt.s32.totalorder %s17_s10, %s17_s10 }
   0x9   :  { %p2488_p3 = scmp.ne.s32.totalorder %s17_s10, %s2487_s18  ;;  %p2493_p5 = scmp.lt.s32.totalorder %s2487_s18, %s2487_s18 }
   0xb   :  { %p2494_p6 = por %p2493_p5, %p2492_p4 }
   0xd   :  { %p2495_p7 = pnand %p2494_p6, %p2488_p3 }
   0xf   :  { %2498 = shalt.err (!%p2495_p7)
}
  0x10   :  { %s2526_s19 = smov 384   ;;  %s2527_s20 = smov 24  }
  0x11   :  { %22 = dma.hbm_to_vmem [thread:$0]  %s2907_s1, 5376, %s17_s10, [#allocation3], %s2526_s19, %s2526_s19, %s2527_s20  }
  0x12   :  { %2521 = dma.done.wait [#allocation3], 5376  }
  0x13   :  { %2522 = vsyncadd [#allocation3], 4294961920  ;;  %vm56_vm0 = vcmask 64512   ;;  %v38_v0 = vld [vmem:[#allocation2 + $0x60] sm:$0xff]  ;;  %v49_v2 = vld [vmem:[%s2906_s0 + $0x8] sm:$0xff]  ;;  %s2528_s1 = smov 64  }
  0x14   :  { %v48_v1 = vld [vmem:[%s2906_s0] sm:$0xff]  ;;  %2122 = vmatprep.subr.mxu0 %v38_v0  ;;  %v2569_v3 = vld [vmem:[#allocation2 + $0x78] sm:$0xff]  ;;  %v41_v10 = vld [vmem:[#allocation2 + $0xa8] sm:$0xff]  ;;  %v2529_v15 = vmov 0.0   ;;  %s2530_s27 = smov 96   ;;  %vm223_vm1 = vcmask 261120  }
  0x15   :  { %2124 = vmatprep.mubr.msk.f32.mxu0 %vm56_vm0, %v48_v1  ;;  %2123 = vmatpush3.msra.mxu0 %v38_v0  ;;  %v27_v16 = vld [vmem:[#allocation2 + $0x8] sm:$0xff]  ;;  %v30_v17 = vld [vmem:[#allocation2 + $0x20] sm:$0xff]  ;;  %v29_v20 = vld [vmem:[#allocation2 + $0x18] sm:$0xff]  ;;  %vm2532_vm2 = vmmov 0   ;;  %vm1986_vm3 = vcmask 17408  }
  0x16   :  { %2125 = vmatmul.mubr.msk.f32.vlgmr.msra.gmra.mrb[0].mxu0 %vm56_vm0, %v49_v2  ;;  %292 = vmatprep.mubr.f32.mxu1 %v2529_v15  ;;  %v26_v18 = vld [vmem:[#allocation2] sm:$0xff]  ;;  %v2576_v19 = vpack.c.bf16 %v30_v17, %v27_v16  ;;  %v33_v21 = vld [vmem:[#allocation2 + $0x38] sm:$0xff]  ;;  %v36_v22 = vld [vmem:[#allocation2 + $0x50] sm:$0xff] }
  0x17   :  { %v2578_v23 = vpack.c.bf16 %v29_v20, %v26_v18  ;;  %v2580_v24 = vpack.c.bf16 %v36_v22, %v33_v21  ;;  %v32_v25 = vld [vmem:[#allocation2 + $0x30] sm:$0xff]  ;;  %v35_v26 = vld [vmem:[#allocation2 + $0x48] sm:$0xff]  ;;  %v42_v37 = vld [vmem:[#allocation2 + $0xc0] sm:$0xff] }
  0x18   :  { %2236 = vmatprep.subr.bf16.mxu1 %v2576_v19  ;;  %2252 = vmatprep.subr.bf16.mxu0 %v2576_v19  ;;  %v2585_v28 = vpack.c.bf16 %v35_v26, %v32_v25  ;;  %v28_v29 = vld [vmem:[#allocation2 + $0x10] sm:$0xff]  ;;  %v31_v30 = vld [vmem:[#allocation2 + $0x28] sm:$0xff]  ;;  %v34_v38 = vld [vmem:[#allocation2 + $0x40] sm:$0xff] }
  0x19   :  { %2238 = vmatpush1.bf16.msra.mxu1 %v2578_v23  ;;  %2254 = vmatpush1.bf16.msra.mxu0 %v2578_v23  ;;  %v2595_v31 = vpack.c.bf16 %v31_v30, %v28_v29  ;;  %v37_v39 = vld [vmem:[#allocation2 + $0x58] sm:$0xff]  ;;  %v2630_v55 = vld [vmem:[#allocation2 + $0x90] sm:$0xff]  ;;  %v53_v16 = vld [vmem:[%s2906_s0 + $0x28] sm:$0xff] }
  0x1a   :  { %2240 = vmatprep.subr.bf16.mxu1 %v2580_v24  ;;  %2256 = vmatprep.subr.bf16.mxu0 %v2580_v24  ;;  %v2605_v40 = vpack.c.bf16 %v37_v39, %v34_v38  ;;  %v54_v17 = vld [vmem:[%s2906_s0 + $0x30] sm:$0xff]  ;;  %v55_v18 = vld [vmem:[%s2906_s0 + $0x38] sm:$0xff] }
  0x1d   :  { %2242 = vmatpush1.bf16.msra.mxu1 %v2585_v28  ;;  %2258 = vmatpush1.bf16.msra.mxu0 %v2585_v28 }
  0x1e   :  { %2268 = vmatprep.subr.bf16.mxu0 %v2576_v19  ;;  %2244 = vmatprep.subr.bf16.mxu1 %v2595_v31 }
  0xe9   :  { %v2571_v4 = vpop.f32.mrb[0].mxu0 }
  0xea   :  { %v147_v5 = vpop.f32.mrb[1].mxu0  ;;  %v187_v53 = vadd.f32 %v2571_v4, %v2569_v3 }
  0xeb   :  { %v186_v6 = vadd.f32 %v147_v5, %v2569_v3 }
  0xed   :  { %v2011_v7 = vmul.f32 -1.442695, %v186_v6 }
  0xef   :  { %2378 = vpow2.f32 %v2011_v7 }
  0xf9   :  { %v2379_v8 = vpop.eup %2378 }
  0xfa   :  { %v198_v9 = vadd.f32 1.0, %v2379_v8 }
  0xfc   :  { %2380 = vrcp.f32 %v198_v9 }
 0x106   :  { %v2381_v11 = vpop.eup %2380 }
 0x107   :  { %v202_v12 = vmul.f32 %v2381_v11, %v41_v10  ;;  %v209_v32 = vsub.f32 1.0, %v2381_v11  ;;  %v215_v35 = vmul.f32 0.0, %v2381_v11 }
 0x109   :  { %204 = vrot.lane.b32.xlu0 %v202_v12, %s2528_s1  ;;  %v50_v12 = vld [vmem:[%s2906_s0 + $0x10] sm:$0xff] }
 0x10a   :  { %2127 = vmatprep.mubr.msk.f32.mxu0 %vm56_vm0, %v50_v12 }
 0x17b   :  { %v205_v13 = vpop.permute.xlu0 %204 }
 0x17c   :  { %v207_v14 = vadd.f32 %v205_v13, %v186_v6  ;;  %v51_v13 = vld [vmem:[%s2906_s0 + $0x18] sm:$0xff] }
 0x17d   :  { %2128 = vmatmul.mubr.msk.f32.gmra.mrb[2].mxu0 %vm56_vm0, %v51_v13 }
 0x17e   :  { %2382 = vtanh.f32 %v207_v14  ;;  %v52_v14 = vld [vmem:[%s2906_s0 + $0x20] sm:$0xff]  ;;  %s2533_s0 = smov [#allocation5]  }
 0x17f   :  { %2130 = vmatprep.mubr.msk.f32.mxu0 %vm56_vm0, %v52_v14  ;;  %s1994_s12 = sshll.u32 %s2533_s0, 4  ;;  %s1995_s12 = int_to_ptr.vmem [resolvable:$true] %s1994_s12 }
 0x180   :  { %s2499_s13 = scalar_lea.vmem %s1995_s12, 32  ;;  %p2504_p9 = scmp.lt.s32.totalorder %s1995_s12, %s1995_s12 }
 0x181   :  { %2131 = vmatmul.mubr.msk.f32.gmra.mrb[4].mxu0 %vm56_vm0, %v53_v16  ;;  %p2500_p8 = scmp.ne.s32.totalorder %s1995_s12, %s2499_s13  ;;  %p2505_p10 = scmp.lt.s32.totalorder %s2499_s13, %s2499_s13 }
 0x182   :  { %2133 = vmatprep.mubr.msk.f32.mxu0 %vm56_vm0, %v54_v17 }
 0x183   :  { %p2506_p11 = por %p2505_p10, %p2504_p9 }
 0x185   :  { %2134 = vmatmul.mubr.msk.f32.gmra.mrb[6].mxu0 %vm56_vm0, %v55_v18  ;;  %p2507_p12 = pnand %p2506_p11, %p2500_p8 }
 0x186   :  { %514 = vmatprep.mubr.f32.mxu0 %v2529_v15 }
 0x188   :  { %v2383_v27 = vpop.eup %2382 }
 0x189   :  { %211 = vrot.lane.b32.xlu0 %v2383_v27, %s2530_s27 }
 0x18d   :  { %417 = vrot.lane.b32.xlu0 %v41_v10, %s2528_s1 }
 0x1fb   :  { %v212_v33 = vpop.permute.xlu0 %211 }
 0x1fc   :  { %v214_v34 = vmul.f32 %v212_v33, %v209_v32 }
 0x1fe   :  { %v2598_v36 = vadd.f32 %v215_v35, %v214_v34 }
 0x1ff   :  { %v2620_v43 = vpop.permute.xlu0 %417 }
 0x200   :  { %219 = vrot.lane.b32.xlu1 %v2598_v36, %s2530_s27 }
 0x204   :  { %221 = vrot.lane.b32.xlu1 %v2529_v15, %s2530_s27 }
 0x208   :  { %386 = vrot.lane.b32.xlu1 %v42_v37, %s2528_s1 }
 0x250   :  { %v2671_v35 = vpop.f32.mrb[2].mxu0 }
 0x251   :  { %v157_v37 = vpop.f32.mrb[3].mxu0 }
 0x254   :  { %v2673_v38 = vpop.f32.mrb[4].mxu0 }
 0x272   :  { %v220_v41 = vpop.permute.xlu1 %219 }
 0x273   :  { %2012 = vmatmul.mubr.msk.f32.vlgmr.msra.gmra.mrb[0].mxu1 %vm223_vm1, %v220_v41 }
 0x274   :  { %2246 = vmatpush3.bf16.msra.mxu1 %v2595_v31  ;;  %298 = vmatprep.mubr.f32.mxu1 %v2529_v15 }
 0x275   :  { %2248 = vmatprep.subr.bf16.mxu1 %v2605_v40 }
 0x276   :  { %v222_v42 = vpop.permute.xlu1 %221 }
 0x277   :  { %2013 = vmatmul.mubr.msk.f32.gmra.mrb[2].mxu1 %vm223_vm1, %v222_v42 }
 0x278   :  { %2250 = vmatpush3.bf16.msra.mxu1 %v2605_v40  ;;  %2144 = vmatprep.mubr.msk.f32.mxu1 %vm223_vm1, %v220_v41 }
 0x279   :  { %2260 = vmatprep.subr.bf16.mxu1 %v2595_v31 }
 0x27a   :  { %v2624_v49 = vpop.permute.xlu1 %386 }
 0x27b   :  { %2145 = vmatmul.mubr.msk.f32.vlgmr.msra.gmra.mrb[4].mxu1 %vm223_vm1, %v222_v42 }
 0x27c   :  { %2262 = vmatpush3.bf16.msra.mxu1 %v2595_v31 }
 0x27d   :  { %2264 = vmatprep.subr.bf16.mxu1 %v2605_v40 }
 0x280   :  { %2266 = vmatpush3.bf16.msra.mxu1 %v2605_v40 }
 0x281   :  { %2276 = vmatprep.subr.bf16.mxu1 %v2595_v31 }
 0x346   :  { %v294_v44 = vpop.f32.mrb[0].mxu1 }
 0x347   :  { %v420_v45 = vadd.f32 %v2620_v43, %v294_v44  ;;  %v296_v46 = vpop.f32.mrb[1].mxu1  ;;  %v409_v54 = vadd.f32 %v294_v44, %v187_v53 }
 0x348   :  { %v377_v57 = vadd.f32 %v296_v46, %v2630_v55 }
 0x349   :  { %422 = vrot.lane.b32.xlu0 %v420_v45, %s2528_s1  ;;  %v2017_v56 = vmul.f32 -1.442695, %v409_v54  ;;  %v188_v54 = vadd.f32 %v157_v37, %v2569_v3 }
 0x34a   :  { %v300_v47 = vpop.f32.mrb[2].mxu1 }
 0x34b   :  { %v301_v48 = vpop.f32.mrb[3].mxu1  ;;  %2384 = vpow2.f32 %v2017_v56 }
 0x34e   :  { %v2146_v50 = vpop.f32.mrb[4].mxu1 }
 0x34f   :  { %v389_v51 = vadd.f32 %v2146_v50, %v2624_v49  ;;  %v369_v52 = vpop.f32.mrb[5].mxu1  ;;  %v378_v58 = vadd.f32 %v2146_v50, %v377_v57 }
 0x351   :  { %391 = vrot.lane.b32.xlu1 %v389_v51, %s2528_s1  ;;  %v2016_v59 = vmul.f32 -1.442695, %v378_v58 }
 0x353   :  { %2386 = vpow2.f32 %v2016_v59 }
 0x355   :  { %v2385_v60 = vpop.eup %2384 }
 0x356   :  { %v413_v61 = vadd.f32 1.0, %v2385_v60 }
 0x358   :  { %2388 = vrcp.f32 %v413_v61 }
 0x35d   :  { %v2387_v62 = vpop.eup %2386 }
 0x35e   :  { %v382_v63 = vadd.f32 1.0, %v2387_v62 }
 0x360   :  { %2390 = vrcp.f32 %v382_v63 }
 0x362   :  { %v2389_v0 = vpop.eup %2388 }
 0x363   :  { %v432_v21 = vsub.f32 1.0, %v2389_v0  ;;  %v438_v25 = vmul.f32 %v2389_v0, %v2598_v36  ;;  %v2675_v36 = vpop.f32.mrb[5].mxu0 }
 0x364   :  { %v2677_v39 = vpop.f32.mrb[6].mxu0 }
 0x365   :  { %v2679_v41 = vpop.f32.mrb[7].mxu0 }
 0x36a   :  { %v2391_v4 = vpop.eup %2390 }
 0x36b   :  { %v401_v29 = vsub.f32 1.0, %v2391_v4  ;;  %v407_v32 = vmul.f32 0.0, %v2391_v4 }
 0x3bb   :  { %v423_v1 = vpop.permute.xlu0 %422 }
 0x3bc   :  { %v425_v2 = vmul.f32 %v2389_v0, %v423_v1 }
 0x3be   :  { %427 = vrot.lane.b32.xlu0 %v425_v2, %s2528_s1 }
 0x3c3   :  { %v392_v5 = vpop.permute.xlu1 %391 }
 0x3c4   :  { %v394_v6 = vmul.f32 %v2391_v4, %v392_v5 }
 0x3c6   :  { %396 = vrot.lane.b32.xlu1 %v394_v6, %s2528_s1 }
 0x430   :  { %v428_v7 = vpop.permute.xlu0 %427 }
 0x431   :  { %v430_v8 = vadd.f32 %v428_v7, %v187_v53 }
 0x433   :  { %2392 = vtanh.f32 %v430_v8 }
 0x438   :  { %v397_v9 = vpop.permute.xlu1 %396 }
 0x439   :  { %v399_v10 = vadd.f32 %v397_v9, %v377_v57 }
 0x43b   :  { %2394 = vtanh.f32 %v399_v10 }
 0x43d   :  { %v2393_v11 = vpop.eup %2392 }
 0x43e   :  { %434 = vrot.lane.b32.xlu0 %v2393_v11, %s2530_s27 }
 0x445   :  { %v2395_v20 = vpop.eup %2394 }
 0x446   :  { %403 = vrot.lane.b32.xlu1 %v2395_v20, %s2530_s27 }
 0x4b0   :  { %v435_v22 = vpop.permute.xlu0 %434 }
 0x4b1   :  { %v437_v26 = vmul.f32 %v435_v22, %v432_v21 }
 0x4b3   :  { %v2663_v27 = vadd.f32 %v438_v25, %v437_v26 }
 0x4b5   :  { %442 = vrot.lane.b32.xlu0 %v2663_v27, %s2530_s27 }
 0x4b8   :  { %v404_v30 = vpop.permute.xlu1 %403 }
 0x4b9   :  { %v406_v33 = vmul.f32 %v404_v30, %v401_v29 }
 0x4bb   :  { %v2667_v34 = vadd.f32 %v407_v32, %v406_v33 }
 0x4bd   :  { %444 = vrot.lane.b32.xlu1 %v2667_v34, %s2530_s27 }
 0x527   :  { %v443_v42 = vpop.permute.xlu0 %442 }
 0x528   :  { %2018 = vmatmul.mubr.msk.f32.vlgmr.msra.gmra.mrb[8].mxu0 %vm223_vm1, %v443_v42  ;;  %2155 = vmatprep.mubr.msk.f32.mxu1 %vm223_vm1, %v443_v42 }
 0x529   :  { %520 = vmatprep.mubr.f32.mxu0 %v2529_v15  ;;  %2270 = vmatpush1.bf16.msra.mxu0 %v2578_v23 }
 0x52a   :  { %2272 = vmatprep.subr.bf16.mxu0 %v2580_v24 }
 0x52d   :  { %2274 = vmatpush1.bf16.msra.mxu0 %v2585_v28 }
 0x52e   :  { %2284 = vmatprep.subr.bf16.mxu0 %v2576_v19 }
 0x52f   :  { %v445_v44 = vpop.permute.xlu1 %444 }
 0x530   :  { %2019 = vmatmul.mubr.msk.f32.gmra.mrb[10].mxu0 %vm223_vm1, %v445_v44  ;;  %2156 = vmatmul.mubr.msk.f32.vlgmr.msra.gmra.mrb[6].mxu1 %vm223_vm1, %v445_v44 }
 0x531   :  { %728 = vmatprep.mubr.f32.mxu0 %v2529_v15  ;;  %2278 = vmatpush3.bf16.msra.mxu1 %v2595_v31 }
 0x532   :  { %2280 = vmatprep.subr.bf16.mxu1 %v2605_v40 }
 0x535   :  { %2282 = vmatpush3.bf16.msra.mxu1 %v2605_v40 }
 0x536   :  { %2292 = vmatprep.subr.bf16.mxu1 %v2595_v31 }
 0x5fb   :  { %v516_v45 = vpop.f32.mrb[8].mxu0 }
 0x5fc   :  { %v634_v46 = vadd.f32 %v516_v45, %v2620_v43  ;;  %v518_v47 = vpop.f32.mrb[9].mxu0  ;;  %v627_v56 = vadd.f32 %v516_v45, %v188_v54 }
 0x5fd   :  { %v599_v58 = vadd.f32 %v518_v47, %v2630_v55  ;;  %v189_v47 = vadd.f32 %v2671_v35, %v2569_v3 }
 0x5fe   :  { %636 = vrot.lane.b32.xlu0 %v634_v46, %s2528_s1  ;;  %v2023_v57 = vmul.f32 -1.442695, %v627_v56 }
 0x600   :  { %2396 = vpow2.f32 %v2023_v57 }
 0x603   :  { %v522_v48 = vpop.f32.mrb[10].mxu0  ;;  %v2157_v50 = vpop.f32.mrb[6].mxu1 }
 0x604   :  { %v607_v51 = vadd.f32 %v2157_v50, %v2624_v49  ;;  %v523_v52 = vpop.f32.mrb[11].mxu0  ;;  %v591_v53 = vpop.f32.mrb[7].mxu1  ;;  %v600_v59 = vadd.f32 %v2157_v50, %v599_v58 }
 0x606   :  { %609 = vrot.lane.b32.xlu1 %v607_v51, %s2528_s1  ;;  %v2022_v60 = vmul.f32 -1.442695, %v600_v59 }
 0x608   :  { %2398 = vpow2.f32 %v2022_v60 }
 0x60a   :  { %v2397_v61 = vpop.eup %2396 }
 0x60b   :  { %v631_v62 = vadd.f32 1.0, %v2397_v61 }
 0x60d   :  { %2400 = vrcp.f32 %v631_v62 }
 0x612   :  { %v2399_v63 = vpop.eup %2398 }
 0x613   :  { %v604_v0 = vadd.f32 1.0, %v2399_v63 }
 0x615   :  { %2402 = vrcp.f32 %v604_v0 }
 0x617   :  { %v2401_v1 = vpop.eup %2400 }
 0x618   :  { %v646_v14 = vsub.f32 1.0, %v2401_v1  ;;  %v652_v17 = vmul.f32 %v2401_v1, %v2663_v27 }
 0x61f   :  { %v2403_v5 = vpop.eup %2402 }
 0x620   :  { %v619_v21 = vsub.f32 1.0, %v2403_v5  ;;  %v625_v25 = vmul.f32 %v2403_v5, %v2667_v34 }
 0x670   :  { %v637_v2 = vpop.permute.xlu0 %636 }
 0x671   :  { %v639_v4 = vmul.f32 %v2401_v1, %v637_v2 }
 0x673   :  { %641 = vrot.lane.b32.xlu0 %v639_v4, %s2528_s1 }
 0x678   :  { %v610_v6 = vpop.permute.xlu1 %609 }
 0x679   :  { %v612_v7 = vmul.f32 %v2403_v5, %v610_v6 }
 0x67b   :  { %614 = vrot.lane.b32.xlu1 %v612_v7, %s2528_s1 }
 0x6e5   :  { %v642_v8 = vpop.permute.xlu0 %641 }
 0x6e6   :  { %v644_v9 = vadd.f32 %v642_v8, %v188_v54 }
 0x6e8   :  { %2404 = vtanh.f32 %v644_v9 }
 0x6ed   :  { %v615_v10 = vpop.permute.xlu1 %614 }
 0x6ee   :  { %v617_v11 = vadd.f32 %v615_v10, %v599_v58 }
 0x6f0   :  { %2406 = vtanh.f32 %v617_v11 }
 0x6f2   :  { %v2405_v12 = vpop.eup %2404 }
 0x6f3   :  { %648 = vrot.lane.b32.xlu0 %v2405_v12, %s2530_s27 }
 0x6fa   :  { %v2407_v13 = vpop.eup %2406 }
 0x6fb   :  { %621 = vrot.lane.b32.xlu1 %v2407_v13, %s2530_s27 }
 0x765   :  { %v649_v16 = vpop.permute.xlu0 %648 }
 0x766   :  { %v651_v18 = vmul.f32 %v649_v16, %v646_v14 }
 0x768   :  { %v2706_v20 = vadd.f32 %v652_v17, %v651_v18 }
 0x76a   :  { %656 = vrot.lane.b32.xlu0 %v2706_v20, %s2530_s27 }
 0x76d   :  { %v622_v22 = vpop.permute.xlu1 %621 }
 0x76e   :  { %v624_v26 = vmul.f32 %v622_v22, %v619_v21 }
 0x770   :  { %v2711_v29 = vadd.f32 %v625_v25, %v624_v26 }
 0x772   :  { %658 = vrot.lane.b32.xlu1 %v2711_v29, %s2530_s27 }
 0x7dc   :  { %v657_v30 = vpop.permute.xlu0 %656 }
 0x7dd   :  { %2024 = vmatmul.mubr.msk.f32.vlgmr.msra.gmra.mrb[12].mxu0 %vm223_vm1, %v657_v30  ;;  %2166 = vmatprep.mubr.msk.f32.mxu1 %vm223_vm1, %v657_v30 }
 0x7de   :  { %734 = vmatprep.mubr.f32.mxu0 %v2529_v15  ;;  %2286 = vmatpush1.bf16.msra.mxu0 %v2578_v23 }
 0x7df   :  { %2288 = vmatprep.subr.bf16.mxu0 %v2580_v24 }
 0x7e2   :  { %2290 = vmatpush1.bf16.msra.mxu0 %v2585_v28 }
 0x7e3   :  { %2300 = vmatprep.subr.bf16.mxu0 %v2576_v19 }
 0x7e4   :  { %v659_v27 = vpop.permute.xlu1 %658 }
 0x7e5   :  { %2025 = vmatmul.mubr.msk.f32.gmra.mrb[14].mxu0 %vm223_vm1, %v659_v27  ;;  %2167 = vmatmul.mubr.msk.f32.vlgmr.msra.gmra.mrb[8].mxu1 %vm223_vm1, %v659_v27 }
 0x7e6   :  { %942 = vmatprep.mubr.f32.mxu0 %v2529_v15  ;;  %2294 = vmatpush3.bf16.msra.mxu1 %v2595_v31 }
 0x7e7   :  { %2296 = vmatprep.subr.bf16.mxu1 %v2605_v40 }
 0x7ea   :  { %2298 = vmatpush3.bf16.msra.mxu1 %v2605_v40 }
 0x7eb   :  { %2308 = vmatprep.subr.bf16.mxu1 %v2595_v31 }
 0x8b0   :  { %v730_v32 = vpop.f32.mrb[12].mxu0 }
 0x8b1   :  { %v848_v33 = vadd.f32 %v730_v32, %v2620_v43  ;;  %v732_v34 = vpop.f32.mrb[13].mxu0  ;;  %v841_v48 = vadd.f32 %v730_v32, %v189_v47 }
 0x8b2   :  { %v813_v51 = vadd.f32 %v732_v34, %v2630_v55 }
 0x8b3   :  { %850 = vrot.lane.b32.xlu0 %v848_v33, %s2528_s1  ;;  %v2029_v50 = vmul.f32 -1.442695, %v841_v48  ;;  %v190_v33 = vadd.f32 %v2675_v36, %v2569_v3 }
 0x8b5   :  { %2408 = vpow2.f32 %v2029_v50 }
 0x8b8   :  { %v736_v37 = vpop.f32.mrb[14].mxu0  ;;  %v2168_v42 = vpop.f32.mrb[8].mxu1 }
 0x8b9   :  { %v821_v44 = vadd.f32 %v2168_v42, %v2624_v49  ;;  %v737_v45 = vpop.f32.mrb[15].mxu0  ;;  %v805_v46 = vpop.f32.mrb[9].mxu1  ;;  %v814_v52 = vadd.f32 %v2168_v42, %v813_v51 }
 0x8bb   :  { %823 = vrot.lane.b32.xlu1 %v821_v44, %s2528_s1  ;;  %v2028_v53 = vmul.f32 -1.442695, %v814_v52 }
 0x8bd   :  { %2410 = vpow2.f32 %v2028_v53 }
 0x8bf   :  { %v2409_v54 = vpop.eup %2408 }
 0x8c0   :  { %v845_v56 = vadd.f32 1.0, %v2409_v54 }
 0x8c2   :  { %2412 = vrcp.f32 %v845_v56 }
 0x8c7   :  { %v2411_v57 = vpop.eup %2410 }
 0x8c8   :  { %v818_v58 = vadd.f32 1.0, %v2411_v57 }
 0x8ca   :  { %2414 = vrcp.f32 %v818_v58 }
 0x8cc   :  { %v2413_v59 = vpop.eup %2412 }
 0x8cd   :  { %v860_v7 = vsub.f32 1.0, %v2413_v59  ;;  %v866_v9 = vmul.f32 %v2413_v59, %v2706_v20 }
 0x8d4   :  { %v2415_v35 = vpop.eup %2414 }
 0x8d5   :  { %v833_v12 = vsub.f32 1.0, %v2415_v35  ;;  %v839_v14 = vmul.f32 %v2415_v35, %v2711_v29 }
 0x925   :  { %v851_v60 = vpop.permute.xlu0 %850 }
 0x926   :  { %v853_v61 = vmul.f32 %v2413_v59, %v851_v60 }
 0x928   :  { %855 = vrot.lane.b32.xlu0 %v853_v61, %s2528_s1 }
 0x92d   :  { %v824_v62 = vpop.permute.xlu1 %823 }
 0x92e   :  { %v826_v63 = vmul.f32 %v2415_v35, %v824_v62 }
 0x930   :  { %828 = vrot.lane.b32.xlu1 %v826_v63, %s2528_s1 }
 0x99a   :  { %v856_v0 = vpop.permute.xlu0 %855 }
 0x99b   :  { %v858_v1 = vadd.f32 %v856_v0, %v189_v47 }
 0x99d   :  { %2416 = vtanh.f32 %v858_v1 }
 0x9a2   :  { %v829_v2 = vpop.permute.xlu1 %828 }
 0x9a3   :  { %v831_v4 = vadd.f32 %v829_v2, %v813_v51 }
 0x9a5   :  { %2418 = vtanh.f32 %v831_v4 }
 0x9a7   :  { %v2417_v5 = vpop.eup %2416 }
 0x9a8   :  { %862 = vrot.lane.b32.xlu0 %v2417_v5, %s2530_s27 }
 0x9af   :  { %v2419_v6 = vpop.eup %2418 }
 0x9b0   :  { %835 = vrot.lane.b32.xlu1 %v2419_v6, %s2530_s27 }
 0xa1a   :  { %v863_v8 = vpop.permute.xlu0 %862 }
 0xa1b   :  { %v865_v10 = vmul.f32 %v863_v8, %v860_v7 }
 0xa1d   :  { %v2741_v11 = vadd.f32 %v866_v9, %v865_v10 }
 0xa1f   :  { %870 = vrot.lane.b32.xlu0 %v2741_v11, %s2530_s27 }
 0xa22   :  { %v836_v13 = vpop.permute.xlu1 %835 }
 0xa23   :  { %v838_v16 = vmul.f32 %v836_v13, %v833_v12 }
 0xa25   :  { %v2746_v17 = vadd.f32 %v839_v14, %v838_v16 }
 0xa27   :  { %872 = vrot.lane.b32.xlu1 %v2746_v17, %s2530_s27 }
 0xa91   :  { %v871_v18 = vpop.permute.xlu0 %870 }
 0xa92   :  { %2030 = vmatmul.mubr.msk.f32.vlgmr.msra.gmra.mrb[16].mxu0 %vm223_vm1, %v871_v18  ;;  %2177 = vmatprep.mubr.msk.f32.mxu1 %vm223_vm1, %v871_v18 }
 0xa93   :  { %948 = vmatprep.mubr.f32.mxu0 %v2529_v15  ;;  %2302 = vmatpush1.bf16.msra.mxu0 %v2578_v23 }
 0xa94   :  { %2304 = vmatprep.subr.bf16.mxu0 %v2580_v24 }
 0xa97   :  { %2306 = vmatpush1.bf16.msra.mxu0 %v2585_v28 }
 0xa98   :  { %2316 = vmatprep.subr.bf16.mxu0 %v2576_v19 }
 0xa99   :  { %v873_v20 = vpop.permute.xlu1 %872 }
 0xa9a   :  { %2031 = vmatmul.mubr.msk.f32.gmra.mrb[18].mxu0 %vm223_vm1, %v873_v20  ;;  %2178 = vmatmul.mubr.msk.f32.vlgmr.msra.gmra.mrb[10].mxu1 %vm223_vm1, %v873_v20 }
 0xa9b   :  { %1156 = vmatprep.mubr.f32.mxu0 %v2529_v15  ;;  %2310 = vmatpush3.bf16.msra.mxu1 %v2595_v31 }
 0xa9c   :  { %2312 = vmatprep.subr.bf16.mxu1 %v2605_v40 }
 0xa9f   :  { %2314 = vmatpush3.bf16.msra.mxu1 %v2605_v40 }
 0xaa0   :  { %2324 = vmatprep.subr.bf16.mxu1 %v2595_v31 }
 0xb65   :  { %v944_v21 = vpop.f32.mrb[16].mxu0 }
 0xb66   :  { %v1062_v22 = vadd.f32 %v944_v21, %v2620_v43  ;;  %v946_v25 = vpop.f32.mrb[17].mxu0  ;;  %v1055_v34 = vadd.f32 %v944_v21, %v190_v33  ;;  %v191_v21 = vadd.f32 %v2673_v38, %v2569_v3 }
 0xb67   :  { %v1027_v42 = vadd.f32 %v946_v25, %v2630_v55 }
 0xb68   :  { %1064 = vrot.lane.b32.xlu0 %v1062_v22, %s2528_s1  ;;  %v2035_v37 = vmul.f32 -1.442695, %v1055_v34 }
 0xb6a   :  { %2420 = vpow2.f32 %v2035_v37 }
 0xb6d   :  { %v950_v26 = vpop.f32.mrb[18].mxu0  ;;  %v2179_v29 = vpop.f32.mrb[10].mxu1 }
 0xb6e   :  { %v1035_v30 = vadd.f32 %v2179_v29, %v2624_v49  ;;  %v951_v27 = vpop.f32.mrb[19].mxu0  ;;  %v1019_v32 = vpop.f32.mrb[11].mxu1  ;;  %v1028_v44 = vadd.f32 %v2179_v29, %v1027_v42 }
 0xb70   :  { %1037 = vrot.lane.b32.xlu1 %v1035_v30, %s2528_s1  ;;  %v2034_v45 = vmul.f32 -1.442695, %v1028_v44 }
 0xb72   :  { %2422 = vpow2.f32 %v2034_v45 }
 0xb74   :  { %v2421_v46 = vpop.eup %2420 }
 0xb75   :  { %v1059_v47 = vadd.f32 1.0, %v2421_v46 }
 0xb77   :  { %2424 = vrcp.f32 %v1059_v47 }
 0xb7c   :  { %v2423_v48 = vpop.eup %2422 }
 0xb7d   :  { %v1032_v50 = vadd.f32 1.0, %v2423_v48 }
 0xb7f   :  { %2426 = vrcp.f32 %v1032_v50 }
 0xb81   :  { %v2425_v51 = vpop.eup %2424 }
 0xb82   :  { %v1074_v62 = vsub.f32 1.0, %v2425_v51  ;;  %v1080_v0 = vmul.f32 %v2425_v51, %v2741_v11 }
 0xb89   :  { %v2427_v36 = vpop.eup %2426 }
 0xb8a   :  { %v1047_v4 = vsub.f32 1.0, %v2427_v36  ;;  %v1053_v6 = vmul.f32 %v2427_v36, %v2746_v17 }
 0xbda   :  { %v1065_v52 = vpop.permute.xlu0 %1064 }
 0xbdb   :  { %v1067_v53 = vmul.f32 %v2425_v51, %v1065_v52 }
 0xbdd   :  { %1069 = vrot.lane.b32.xlu0 %v1067_v53, %s2528_s1 }
 0xbe2   :  { %v1038_v54 = vpop.permute.xlu1 %1037 }
 0xbe3   :  { %v1040_v56 = vmul.f32 %v2427_v36, %v1038_v54 }
 0xbe5   :  { %1042 = vrot.lane.b32.xlu1 %v1040_v56, %s2528_s1 }
 0xc4f   :  { %v1070_v57 = vpop.permute.xlu0 %1069 }
 0xc50   :  { %v1072_v58 = vadd.f32 %v1070_v57, %v190_v33 }
 0xc52   :  { %2428 = vtanh.f32 %v1072_v58 }
 0xc57   :  { %v1043_v59 = vpop.permute.xlu1 %1042 }
 0xc58   :  { %v1045_v60 = vadd.f32 %v1043_v59, %v1027_v42 }
 0xc5a   :  { %2430 = vtanh.f32 %v1045_v60 }
 0xc5c   :  { %v2429_v61 = vpop.eup %2428 }
 0xc5d   :  { %1076 = vrot.lane.b32.xlu0 %v2429_v61, %s2530_s27 }
 0xc64   :  { %v2431_v35 = vpop.eup %2430 }
 0xc65   :  { %1049 = vrot.lane.b32.xlu1 %v2431_v35, %s2530_s27 }
 0xccf   :  { %v1077_v63 = vpop.permute.xlu0 %1076 }
 0xcd0   :  { %v1079_v1 = vmul.f32 %v1077_v63, %v1074_v62 }
 0xcd2   :  { %v2776_v2 = vadd.f32 %v1080_v0, %v1079_v1 }
 0xcd4   :  { %1084 = vrot.lane.b32.xlu0 %v2776_v2, %s2530_s27 }
 0xcd7   :  { %v1050_v5 = vpop.permute.xlu1 %1049 }
 0xcd8   :  { %v1052_v7 = vmul.f32 %v1050_v5, %v1047_v4 }
 0xcda   :  { %v2781_v8 = vadd.f32 %v1053_v6, %v1052_v7 }
 0xcdc   :  { %1086 = vrot.lane.b32.xlu1 %v2781_v8, %s2530_s27 }
 0xd46   :  { %v1085_v9 = vpop.permute.xlu0 %1084 }
 0xd47   :  { %2036 = vmatmul.mubr.msk.f32.vlgmr.msra.gmra.mrb[20].mxu0 %vm223_vm1, %v1085_v9  ;;  %2188 = vmatprep.mubr.msk.f32.mxu1 %vm223_vm1, %v1085_v9  ;;  %v192_v9 = vadd.f32 %v2679_v41, %v2569_v3 }
 0xd48   :  { %1162 = vmatprep.mubr.f32.mxu0 %v2529_v15  ;;  %2318 = vmatpush1.bf16.msra.mxu0 %v2578_v23 }
 0xd49   :  { %2320 = vmatprep.subr.bf16.mxu0 %v2580_v24 }
 0xd4c   :  { %2322 = vmatpush1.bf16.msra.mxu0 %v2585_v28 }
 0xd4d   :  { %2332 = vmatprep.subr.bf16.mxu0 %v2576_v19 }
 0xd4e   :  { %v1087_v10 = vpop.permute.xlu1 %1086 }
 0xd4f   :  { %2037 = vmatmul.mubr.msk.f32.gmra.mrb[22].mxu0 %vm223_vm1, %v1087_v10  ;;  %2189 = vmatmul.mubr.msk.f32.vlgmr.msra.gmra.mrb[12].mxu1 %vm223_vm1, %v1087_v10 }
 0xd50   :  { %1370 = vmatprep.mubr.f32.mxu0 %v2529_v15  ;;  %2326 = vmatpush3.bf16.msra.mxu1 %v2595_v31 }
 0xd51   :  { %2328 = vmatprep.subr.bf16.mxu1 %v2605_v40 }
 0xd54   :  { %2330 = vmatpush3.bf16.msra.mxu1 %v2605_v40 }
 0xd55   :  { %2340 = vmatprep.subr.bf16.mxu1 %v2595_v31 }
 0xe1a   :  { %v1158_v11 = vpop.f32.mrb[20].mxu0 }
 0xe1b   :  { %v1276_v12 = vadd.f32 %v1158_v11, %v2620_v43  ;;  %v1160_v13 = vpop.f32.mrb[21].mxu0  ;;  %v1269_v22 = vadd.f32 %v1158_v11, %v191_v21 }
 0xe1c   :  { %v1241_v26 = vadd.f32 %v1160_v13, %v2630_v55 }
 0xe1d   :  { %1278 = vrot.lane.b32.xlu0 %v1276_v12, %s2528_s1  ;;  %v2041_v25 = vmul.f32 -1.442695, %v1269_v22 }
 0xe1f   :  { %2432 = vpow2.f32 %v2041_v25 }
 0xe22   :  { %v1164_v14 = vpop.f32.mrb[22].mxu0  ;;  %v2190_v16 = vpop.f32.mrb[12].mxu1 }
 0xe23   :  { %v1249_v17 = vadd.f32 %v2190_v16, %v2624_v49  ;;  %v1165_v18 = vpop.f32.mrb[23].mxu0  ;;  %v1233_v20 = vpop.f32.mrb[13].mxu1  ;;  %v1242_v29 = vadd.f32 %v2190_v16, %v1241_v26 }
 0xe25   :  { %1251 = vrot.lane.b32.xlu1 %v1249_v17, %s2528_s1  ;;  %v2040_v30 = vmul.f32 -1.442695, %v1242_v29 }
 0xe27   :  { %2434 = vpow2.f32 %v2040_v30 }
 0xe29   :  { %v2433_v27 = vpop.eup %2432 }
 0xe2a   :  { %v1273_v32 = vadd.f32 1.0, %v2433_v27 }
 0xe2c   :  { %2436 = vrcp.f32 %v1273_v32 }
 0xe31   :  { %v2435_v33 = vpop.eup %2434 }
 0xe32   :  { %v1246_v34 = vadd.f32 1.0, %v2435_v33 }
 0xe34   :  { %2438 = vrcp.f32 %v1246_v34 }
 0xe36   :  { %v2437_v37 = vpop.eup %2436 }
 0xe37   :  { %v1288_v36 = vsub.f32 1.0, %v2437_v37  ;;  %v1294_v56 = vmul.f32 %v2437_v37, %v2776_v2 }
 0xe3e   :  { %v2439_v38 = vpop.eup %2438 }
 0xe3f   :  { %v1261_v59 = vsub.f32 1.0, %v2439_v38  ;;  %v1267_v61 = vmul.f32 %v2439_v38, %v2781_v8 }
 0xe8f   :  { %v1279_v42 = vpop.permute.xlu0 %1278 }
 0xe90   :  { %v1281_v44 = vmul.f32 %v2437_v37, %v1279_v42 }
 0xe92   :  { %1283 = vrot.lane.b32.xlu0 %v1281_v44, %s2528_s1 }
 0xe97   :  { %v1252_v45 = vpop.permute.xlu1 %1251 }
 0xe98   :  { %v1254_v46 = vmul.f32 %v2439_v38, %v1252_v45 }
 0xe9a   :  { %1256 = vrot.lane.b32.xlu1 %v1254_v46, %s2528_s1 }
 0xf04   :  { %v1284_v47 = vpop.permute.xlu0 %1283 }
 0xf05   :  { %v1286_v48 = vadd.f32 %v1284_v47, %v191_v21 }
 0xf07   :  { %2440 = vtanh.f32 %v1286_v48 }
 0xf0c   :  { %v1257_v50 = vpop.permute.xlu1 %1256 }
 0xf0d   :  { %v1259_v51 = vadd.f32 %v1257_v50, %v1241_v26 }
 0xf0f   :  { %2442 = vtanh.f32 %v1259_v51 }
 0xf11   :  { %v2441_v52 = vpop.eup %2440 }
 0xf12   :  { %1290 = vrot.lane.b32.xlu0 %v2441_v52, %s2530_s27 }
 0xf19   :  { %v2443_v53 = vpop.eup %2442 }
 0xf1a   :  { %1263 = vrot.lane.b32.xlu1 %v2443_v53, %s2530_s27 }
 0xf84   :  { %v1291_v54 = vpop.permute.xlu0 %1290 }
 0xf85   :  { %v1293_v57 = vmul.f32 %v1291_v54, %v1288_v36 }
 0xf87   :  { %v2811_v58 = vadd.f32 %v1294_v56, %v1293_v57 }
 0xf89   :  { %1298 = vrot.lane.b32.xlu0 %v2811_v58, %s2530_s27 }
 0xf8c   :  { %v1264_v60 = vpop.permute.xlu1 %1263 }
 0xf8d   :  { %v1266_v35 = vmul.f32 %v1264_v60, %v1261_v59  ;;  %v2476_v59 = vld [vmem:[#allocation2 + $0x78] sm:$0xff] }
 0xf8f   :  { %v2816_v62 = vadd.f32 %v1267_v61, %v1266_v35 }
 0xf91   :  { %1300 = vrot.lane.b32.xlu1 %v2816_v62, %s2530_s27 }
 0xffb   :  { %v1299_v63 = vpop.permute.xlu0 %1298 }
 0xffc   :  { %2042 = vmatmul.mubr.msk.f32.vlgmr.msra.gmra.mrb[24].mxu0 %vm223_vm1, %v1299_v63  ;;  %2199 = vmatprep.mubr.msk.f32.mxu1 %vm223_vm1, %v1299_v63 }
 0xffd   :  { %1376 = vmatprep.mubr.f32.mxu0 %v2529_v15  ;;  %2334 = vmatpush1.bf16.msra.mxu0 %v2578_v23 }
 0xffe   :  { %2336 = vmatprep.subr.bf16.mxu0 %v2580_v24 }
0x1001   :  { %2338 = vmatpush1.bf16.msra.mxu0 %v2585_v28 }
0x1002   :  { %2348 = vmatprep.subr.bf16.mxu0 %v2576_v19 }
0x1003   :  { %v1301_v0 = vpop.permute.xlu1 %1300 }
0x1004   :  { %2043 = vmatmul.mubr.msk.f32.gmra.mrb[26].mxu0 %vm223_vm1, %v1301_v0  ;;  %2200 = vmatmul.mubr.msk.f32.vlgmr.msra.gmra.mrb[14].mxu1 %vm223_vm1, %v1301_v0 }
0x1005   :  { %1584 = vmatprep.mubr.f32.mxu0 %v2529_v15  ;;  %2342 = vmatpush3.bf16.msra.mxu1 %v2595_v31 }
0x1006   :  { %2344 = vmatprep.subr.bf16.mxu1 %v2605_v40 }
0x1009   :  { %2346 = vmatpush3.bf16.msra.mxu1 %v2605_v40 }
0x100a   :  { %2356 = vmatprep.subr.bf16.mxu1 %v2595_v31 }
0x10cf   :  { %v1372_v1 = vpop.f32.mrb[24].mxu0 }
0x10d0   :  { %v1490_v2 = vadd.f32 %v1372_v1, %v2620_v43  ;;  %v1374_v4 = vpop.f32.mrb[25].mxu0  ;;  %v1483_v10 = vadd.f32 %v1372_v1, %v192_v9 }
0x10d1   :  { %v1455_v12 = vadd.f32 %v1374_v4, %v2630_v55 }
0x10d2   :  { %1492 = vrot.lane.b32.xlu0 %v1490_v2, %s2528_s1  ;;  %v2047_v11 = vmul.f32 -1.442695, %v1483_v10 }
0x10d4   :  { %2444 = vpow2.f32 %v2047_v11 }
0x10d7   :  { %v1378_v19 = vpop.f32.mrb[26].mxu0  ;;  %v2201_v5 = vpop.f32.mrb[14].mxu1 }
0x10d8   :  { %v1463_v6 = vadd.f32 %v2201_v5, %v2624_v49  ;;  %v1379_v7 = vpop.f32.mrb[27].mxu0  ;;  %v1447_v8 = vpop.f32.mrb[15].mxu1  ;;  %v1456_v13 = vadd.f32 %v2201_v5, %v1455_v12 }
0x10da   :  { %1465 = vrot.lane.b32.xlu1 %v1463_v6, %s2528_s1  ;;  %v2046_v14 = vmul.f32 -1.442695, %v1456_v13 }
0x10dc   :  { %2446 = vpow2.f32 %v2046_v14 }
0x10de   :  { %v2445_v16 = vpop.eup %2444 }
0x10df   :  { %v1487_v17 = vadd.f32 1.0, %v2445_v16 }
0x10e1   :  { %2448 = vrcp.f32 %v1487_v17 }
0x10e6   :  { %v2447_v18 = vpop.eup %2446 }
0x10e7   :  { %v1460_v20 = vadd.f32 1.0, %v2447_v18 }
0x10e9   :  { %2450 = vrcp.f32 %v1460_v20 }
0x10eb   :  { %v2449_v21 = vpop.eup %2448 }
0x10ec   :  { %v1502_v37 = vsub.f32 1.0, %v2449_v21  ;;  %v1508_v44 = vmul.f32 %v2449_v21, %v2811_v58 }
0x10f3   :  { %v2451_v3 = vpop.eup %2450 }
0x10f4   :  { %v1475_v46 = vsub.f32 1.0, %v2451_v3  ;;  %v1481_v48 = vmul.f32 %v2451_v3, %v2816_v62 }
0x1144   :  { %v1493_v22 = vpop.permute.xlu0 %1492 }
0x1145   :  { %v1495_v25 = vmul.f32 %v2449_v21, %v1493_v22 }
0x1147   :  { %1497 = vrot.lane.b32.xlu0 %v1495_v25, %s2528_s1 }
0x114c   :  { %v1466_v41 = vpop.permute.xlu1 %1465 }
0x114d   :  { %v1468_v26 = vmul.f32 %v2451_v3, %v1466_v41 }
0x114f   :  { %1470 = vrot.lane.b32.xlu1 %v1468_v26, %s2528_s1 }
0x11b9   :  { %v1498_v29 = vpop.permute.xlu0 %1497 }
0x11ba   :  { %v1500_v30 = vadd.f32 %v1498_v29, %v192_v9 }
0x11bc   :  { %2452 = vtanh.f32 %v1500_v30 }
0x11c1   :  { %v1471_v27 = vpop.permute.xlu1 %1470 }
0x11c2   :  { %v1473_v32 = vadd.f32 %v1471_v27, %v1455_v12 }
0x11c4   :  { %2454 = vtanh.f32 %v1473_v32 }
0x11c6   :  { %v2453_v33 = vpop.eup %2452 }
0x11c7   :  { %1504 = vrot.lane.b32.xlu0 %v2453_v33, %s2530_s27 }
0x11ce   :  { %v2455_v34 = vpop.eup %2454 }
0x11cf   :  { %1477 = vrot.lane.b32.xlu1 %v2455_v34, %s2530_s27 }
0x1239   :  { %v1505_v42 = vpop.permute.xlu0 %1504 }
0x123a   :  { %v1507_v38 = vmul.f32 %v1505_v42, %v1502_v37 }
0x123c   :  { %v2846_v45 = vadd.f32 %v1508_v44, %v1507_v38 }
0x123e   :  { %1512 = vrot.lane.b32.xlu0 %v2846_v45, %s2530_s27 }
0x1241   :  { %v1478_v47 = vpop.permute.xlu1 %1477 }
0x1242   :  { %v1480_v50 = vmul.f32 %v1478_v47, %v1475_v46 }
0x1244   :  { %v2851_v51 = vadd.f32 %v1481_v48, %v1480_v50 }
0x1246   :  { %1514 = vrot.lane.b32.xlu1 %v2851_v51, %s2530_s27 }
0x12b0   :  { %v1513_v52 = vpop.permute.xlu0 %1512 }
0x12b1   :  { %2048 = vmatmul.mubr.msk.f32.vlgmr.msra.gmra.mrb[28].mxu0 %vm223_vm1, %v1513_v52  ;;  %2210 = vmatprep.mubr.msk.f32.mxu1 %vm223_vm1, %v1513_v52 }
0x12b2   :  { %1590 = vmatprep.mubr.f32.mxu0 %v2529_v15  ;;  %2350 = vmatpush1.bf16.msra.mxu0 %v2578_v23 }
0x12b3   :  { %2352 = vmatprep.subr.bf16.mxu0 %v2580_v24 }
0x12b6   :  { %2354 = vmatpush1.bf16.msra.mxu0 %v2585_v28 }
0x12b8   :  { %v1515_v53 = vpop.permute.xlu1 %1514 }
0x12b9   :  { %2049 = vmatmul.mubr.msk.f32.gmra.mrb[30].mxu0 %vm223_vm1, %v1515_v53  ;;  %2211 = vmatmul.mubr.msk.f32.vlgmr.msra.gmra.mrb[16].mxu1 %vm223_vm1, %v1515_v53  ;;  %v44_v53 = vld [vmem:[#allocation2 + $0xf0] sm:$0xff] }
0x12ba   :  { %1798 = vmatprep.mubr.f32.mxu0 %v2529_v15  ;;  %2358 = vmatpush3.bf16.msra.mxu1 %v2595_v31  ;;  %v193_v31 = vadd.f32 %v2476_v59, %v2677_v39 }
0x12bb   :  { %2360 = vmatprep.subr.bf16.mxu1 %v2605_v40 }
0x12be   :  { %2362 = vmatpush3.bf16.msra.mxu1 %v2605_v40 }
0x1384   :  { %v1586_v36 = vpop.f32.mrb[28].mxu0 }
0x1385   :  { %v1704_v23 = vadd.f32 %v1586_v36, %v2620_v43  ;;  %v1588_v54 = vpop.f32.mrb[29].mxu0  ;;  %v1697_v60 = vadd.f32 %v1586_v36, %v193_v31  ;;  %v45_v36 = vld [vmem:[#allocation2 + $0x108] sm:$0xff] }
0x1386   :  { %v1669_v40 = vadd.f32 %v1588_v54, %v2630_v55  ;;  %v46_v54 = vld [vmem:[#allocation2 + $0x120] sm:$0xff] }
0x1387   :  { %1706 = vrot.lane.b32.xlu0 %v1704_v23, %s2528_s1  ;;  %v2053_v61 = vmul.f32 -1.442695, %v1697_v60  ;;  %v2531_v23 = vmov 0.0|0.0  }
0x1388   :  { %2363 = vmatprep.subr.bf16.mxu0 %v2531_v23 }
0x1389   :  { %2456 = vpow2.f32 %v2053_v61  ;;  %v47_v61 = vld [vmem:[#allocation2 + $0x138] sm:$0xff] }
0x138c   :  { %v1592_v24 = vpop.f32.mrb[30].mxu0  ;;  %v2212_v28 = vpop.f32.mrb[16].mxu1 }
0x138d   :  { %v1677_v56 = vadd.f32 %v2212_v28, %v2624_v49  ;;  %v1593_v57 = vpop.f32.mrb[31].mxu0  ;;  %v1661_v58 = vpop.f32.mrb[17].mxu1  ;;  %v1670_v43 = vadd.f32 %v2212_v28, %v1669_v40  ;;  %v2367_v24 = vpack.c.bf16 %v46_v54, %v45_v36 }
0x138f   :  { %1679 = vrot.lane.b32.xlu1 %v1677_v56, %s2528_s1  ;;  %v2052_v35 = vmul.f32 -1.442695, %v1670_v43 }
0x1391   :  { %2458 = vpow2.f32 %v2052_v35 }
0x1393   :  { %v2457_v62 = vpop.eup %2456 }
0x1394   :  { %v1701_v63 = vadd.f32 1.0, %v2457_v62 }
0x1396   :  { %2460 = vrcp.f32 %v1701_v63 }
0x139b   :  { %v2459_v0 = vpop.eup %2458 }
0x139c   :  { %v1674_v1 = vadd.f32 1.0, %v2459_v0 }
0x139e   :  { %2462 = vrcp.f32 %v1674_v1 }
0x13a0   :  { %v2461_v2 = vpop.eup %2460 }
0x13a1   :  { %v1716_v13 = vsub.f32 1.0, %v2461_v2  ;;  %v1722_v16 = vmul.f32 %v2461_v2, %v2846_v45 }
0x13a8   :  { %v2463_v39 = vpop.eup %2462 }
0x13a9   :  { %v1689_v20 = vsub.f32 1.0, %v2463_v39  ;;  %v1695_v22 = vmul.f32 %v2463_v39, %v2851_v51 }
0x13f9   :  { %v1707_v4 = vpop.permute.xlu0 %1706 }
0x13fa   :  { %v1709_v19 = vmul.f32 %v2461_v2, %v1707_v4 }
0x13fc   :  { %1711 = vrot.lane.b32.xlu0 %v1709_v19, %s2528_s1 }
0x1401   :  { %v1680_v5 = vpop.permute.xlu1 %1679 }
0x1402   :  { %v1682_v6 = vmul.f32 %v2463_v39, %v1680_v5 }
0x1404   :  { %1684 = vrot.lane.b32.xlu1 %v1682_v6, %s2528_s1 }
0x146e   :  { %v1712_v7 = vpop.permute.xlu0 %1711 }
0x146f   :  { %v1714_v8 = vadd.f32 %v1712_v7, %v193_v31 }
0x1471   :  { %2464 = vtanh.f32 %v1714_v8 }
0x1476   :  { %v1685_v9 = vpop.permute.xlu1 %1684 }
0x1477   :  { %v1687_v10 = vadd.f32 %v1685_v9, %v1669_v40 }
0x1479   :  { %2466 = vtanh.f32 %v1687_v10 }
0x147b   :  { %v2465_v11 = vpop.eup %2464 }
0x147c   :  { %1718 = vrot.lane.b32.xlu0 %v2465_v11, %s2530_s27 }
0x1483   :  { %v2467_v12 = vpop.eup %2466 }
0x1484   :  { %1691 = vrot.lane.b32.xlu1 %v2467_v12, %s2530_s27 }
0x14ee   :  { %v1719_v14 = vpop.permute.xlu0 %1718 }
0x14ef   :  { %v1721_v17 = vmul.f32 %v1719_v14, %v1716_v13 }
0x14f1   :  { %v1723_v18 = vadd.f32 %v1722_v16, %v1721_v17 }
0x14f3   :  { %1726 = vrot.lane.b32.xlu0 %v1723_v18, %s2530_s27 }
0x14f6   :  { %v1692_v21 = vpop.permute.xlu1 %1691 }
0x14f7   :  { %v1694_v25 = vmul.f32 %v1692_v21, %v1689_v20 }
0x14f9   :  { %v1696_v3 = vadd.f32 %v1695_v22, %v1694_v25 }
0x14fb   :  { %1728 = vrot.lane.b32.xlu1 %v1696_v3, %s2530_s27 }
0x1565   :  { %v1727_v41 = vpop.permute.xlu0 %1726 }
0x1566   :  { %2054 = vmatmul.mubr.msk.f32.vlgmr.msra.gmra.mrb[32].mxu0 %vm223_vm1, %v1727_v41  ;;  %2221 = vmatprep.mubr.msk.f32.mxu1 %vm223_vm1, %v1727_v41 }
0x1567   :  { %1803 = vmatprep.mubr.f32.mxu0 %v2529_v15 }
0x156d   :  { %v1729_v26 = vpop.permute.xlu1 %1728 }
0x156e   :  { %2055 = vmatmul.mubr.msk.f32.gmra.mrb[34].mxu0 %vm223_vm1, %v1729_v26  ;;  %2222 = vmatmul.mubr.msk.f32.vlgmr.msra.gmra.mrb[18].mxu1 %vm223_vm1, %v1729_v26 }
0x156f   :  { %2232 = vmatprep.mubr.msk.f32.mxu0 %vm2532_vm2, %v2529_v15 }
0x1639   :  { %v1800_v29 = vpop.f32.mrb[32].mxu0 }
0x163a   :  { %v1801_v30 = vpop.f32.mrb[33].mxu0 }
0x163b   :  { %v1882_v42 = vadd.f32 %v1801_v30, %v2630_v55 }
0x1641   :  { %v1805_v27 = vpop.f32.mrb[34].mxu0  ;;  %v2223_v32 = vpop.f32.mrb[18].mxu1 }
0x1642   :  { %v1890_v33 = vadd.f32 %v2223_v32, %v2624_v49  ;;  %v1806_v34 = vpop.f32.mrb[35].mxu0  ;;  %v1874_v37 = vpop.f32.mrb[19].mxu1  ;;  %v1883_v44 = vadd.f32 %v2223_v32, %v1882_v42  ;;  %v43_v49 = vld [vmem:[#allocation2 + $0xd8] sm:$0xff] }
0x1643   :  { %v2364_v55 = vpack.c.bf16 %v44_v53, %v43_v49 }
0x1644   :  { %1892 = vrot.lane.b32.xlu0 %v1890_v33, %s2528_s1  ;;  %v2058_v38 = vmul.f32 -1.442695, %v1883_v44 }
0x1645   :  { %2365 = vmatpush3.bf16.msra.mxu0 %v2364_v55 }
0x1646   :  { %2468 = vpow2.f32 %v2058_v38  ;;  %2366 = vmatprep.subr.bf16.mxu0 %v2531_v23 }
0x1649   :  { %2368 = vmatpush3.bf16.msra.mxu0 %v2367_v24 }
0x1650   :  { %v2469_v45 = vpop.eup %2468 }
0x1651   :  { %v1887_v46 = vadd.f32 1.0, %v2469_v45 }
0x1653   :  { %2470 = vrcp.f32 %v1887_v46 }
0x165d   :  { %v2471_v47 = vpop.eup %2470 }
0x165e   :  { %v1902_v56 = vsub.f32 1.0, %v2471_v47  ;;  %v1908_v58 = vmul.f32 %v2471_v47, %v1696_v3 }
0x16b6   :  { %v1893_v48 = vpop.permute.xlu0 %1892 }
0x16b7   :  { %v1895_v50 = vmul.f32 %v2471_v47, %v1893_v48 }
0x16b9   :  { %1897 = vrot.lane.b32.xlu1 %v1895_v50, %s2528_s1 }
0x172b   :  { %v1898_v51 = vpop.permute.xlu1 %1897 }
0x172c   :  { %v1900_v52 = vadd.f32 %v1898_v51, %v1882_v42 }
0x172e   :  { %2472 = vtanh.f32 %v1900_v52 }
0x1738   :  { %v2473_v28 = vpop.eup %2472 }
0x1739   :  { %1904 = vrot.lane.b32.xlu0 %v2473_v28, %s2530_s27 }
0x17ab   :  { %v1905_v57 = vpop.permute.xlu0 %1904 }
0x17ac   :  { %v1907_v59 = vmul.f32 %v1905_v57, %v1902_v56 }
0x17ae   :  { %v1909_v31 = vadd.f32 %v1908_v58, %v1907_v59 }
0x17b0   :  { %1911 = vrot.lane.b32.xlu1 %v1909_v31, %s2530_s27 }
0x1822   :  { %v1912_v60 = vpop.permute.xlu1 %1911 }
0x1823   :  { %2233 = vmatmul.mubr.msk.f32.vlgmr.msra.gmra.mrb[36].mxu0 %vm223_vm1, %v1912_v60 }
0x18f6   :  { %v1981_v40 = vpop.f32.mrb[36].mxu0 }
0x18f7   :  { %v1982_v15 = vadd.f32 %v1981_v40, %v47_v61  ;;  %v2234_v43 = vpop.f32.mrb[37].mxu0 }
0x18f9   :  { %2474 = vtanh.f32 %v1982_v15 }
0x1903   :  { %v2475_v35 = vpop.eup %2474 }
0x1904   :  { %1987 = vst.msk [vmem:[#allocation5] sm:$0x3] %vm1986_vm3, %v2475_v35 }
0x1905   :  { %2510 = shalt.err (!%p2507_p12)
}
0x1906   :  { %s2511_s16 = scalar_lea.hbm %s2908_s2, 32 }
0x1907   :  { %p2512_p13 = scmp.ne.s32.totalorder %s2908_s2, %s2511_s16  ;;  %p2515_p0 = scmp.lt.u32.totalorder %s2511_s16, %s2908_s2 }
0x1909   :  { %p2517_p1 = pnand %p2515_p0, %p2512_p13 }
0x190b   :  { %2520 = shalt.err (!%p2517_p1)
}
0x190c   :  { %1997 = dma.vmem_to_hbm [thread:$0]  %s1995_s12, 32, %s2908_s2, [#allocation4]  }
0x190d   :  { %2523 = dma.done.wait [#allocation4], 32  }
0x190e   :  { %2524 = vsyncadd [#allocation4], 4294967264 }
0x190f   :  { %2001 = vsyncpa [#allocation3], 1 }
0x1910   :  { %2002 = vsyncpa [#allocation4], 1 }

</bundles_post_ra>
